<compile_context>
chip_gen: v5e
topology: v5e:2x2
jax: 0.10.0
libtpu: 0.0.40
codegen_flags: <defaults>
</compile_context>

<pallas_src>
import jax
import jax.numpy as jnp
from jax.experimental import pallas as pl
from jax.experimental.pallas import tpu as pltpu


def lstm_kernel(x_ref,      # (T*B, I)  f32, time-major flattened input
                w_ref,      # (3H, 4H)  bf16 = [W_hh0; W_ih1; W_hh1] (pre-transposed)
                s_ref,      # (I+4, 4H) f32  = [W_ih0; b0; b1; fc_w(row,padded); fc_b(padded)]
                out_ref):   # (B, 1)    f32
    B = out_ref.shape[0]
    TB, I = x_ref.shape
    T = TB // B
    H4 = w_ref.shape[1]
    H = H4 // 4

    def sig(z):
        # sigmoid via tanh: avoids exp + full-precision divide on the
        # recurrence-critical path; tanh goes to the EUP (separate slot).
        return 0.5 * jnp.tanh(0.5 * z) + 0.5

    def act(gates, c):
        # PyTorch gate order: i, f, g, o  (all elementwise math in f32)
        i = sig(gates[:, 0 * H:1 * H])
        f = sig(gates[:, 1 * H:2 * H])
        g = jnp.tanh(gates[:, 2 * H:3 * H])
        o = sig(gates[:, 3 * H:4 * H])
        c_new = f * c + i * g
        h_new = o * jnp.tanh(c_new)
        return h_new, c_new

    # ---- hoisted, non-recurrent work (off the serial chain) ----------------
    wih0 = s_ref[0:I, :]                      # (I, 4H)
    b0 = s_ref[I:I + 1, :]                    # (1, 4H)
    x_all = x_ref[...]                        # (T*B, I)
    if I == 1:
        # Input projection as one vectorized VPU broadcast-multiply pass.
        xw_all = x_all * wih0 + b0            # (T*B,1)*(1,4H)+(1,4H) -> (T*B,4H)
    else:
        xw_all = jnp.dot(x_all, wih0, preferred_element_type=jnp.float32) + b0

    b1 = jnp.broadcast_to(s_ref[I + 1:I + 2, :], (B, H4))   # built once

    # h/c live in vregs (carried values), never in VMEM scratch.
    h0 = jnp.zeros((B, H), jnp.float32)
    c0 = jnp.zeros((B, H), jnp.float32)
    h1 = jnp.zeros((B, H), jnp.float32)
    c1 = jnp.zeros((B, H), jnp.float32)

    # T is tiny & static -> fully unrolled; weight slices are re-read from the
    # VMEM ref at each use so regalloc never pins ~full-slab live ranges.
    for t in range(T):
        xw = xw_all[t * B:(t + 1) * B, :]     # (B, 4H), static slice, precomputed

        # Layer-1 recurrent half: depends only on h1_{t-1}, so it can overlap
        # with layer 0 (this is why the K=2H fused dot was split).
        g1_rec = jnp.dot(h1.astype(jnp.bfloat16), w_ref[2 * H:3 * H, :],
                         preferred_element_type=jnp.float32)

        # Layer 0: recurrent matmul on the bf16 MXU path, f32 accumulate.
        gates0 = jnp.dot(h0.astype(jnp.bfloat16), w_ref[0:H, :],
                         preferred_element_type=jnp.float32) + xw
        h0, c0 = act(gates0, c0)

        # Layer 1: input half uses the freshly computed h0.
        gates1 = (jnp.dot(h0.astype(jnp.bfloat16), w_ref[H:2 * H, :],
                          preferred_element_type=jnp.float32)
                  + g1_rec + b1)
        h1, c1 = act(gates1, c1)

    # Final Linear on the last timestep's top-layer hidden state (f32).
    fc_w = s_ref[I + 2:I + 3, :][:, 0:H]      # (1, H)
    fc_b = s_ref[I + 3:I + 4, :][:, 0:1]      # (1, 1)
    out_ref[...] = jnp.sum(h1 * fc_w, axis=1, keepdims=True) + fc_b


def lstm_model_forward(x, params):
    """x: (B, T) or (B, T, I) float32, batch_first like the PyTorch module."""
    if x.ndim == 2:
        x = x[..., None]
    B, T, I = x.shape
    H = params["whh0"].shape[0]

    # Layout plumbing (wrapper-side, done once):
    # time-major + flattened input, and two packed operand slabs -> 3 DMAs.
    x_flat = jnp.transpose(x, (1, 0, 2)).reshape(T * B, I).astype(jnp.float32)

    w_slab = jnp.concatenate(
        [params["whh0"], params["wih1"], params["whh1"]], axis=0
    ).astype(jnp.bfloat16)                                       # (3H, 4H) bf16

    fc_w_row = jnp.pad(params["fcw"].T, ((0, 0), (0, 4 * H - H)))    # (1, 4H)
    fc_b_row = jnp.pad(params["fcb"], ((0, 0), (0, 4 * H - 1)))      # (1, 4H)
    s_slab = jnp.concatenate(
        [params["wih0"], params["b0"], params["b1"], fc_w_row, fc_b_row],
        axis=0).astype(jnp.float32)                              # (I+4, 4H) f32

    out = pl.pallas_call(
        lstm_kernel,
        out_shape=jax.ShapeDtypeStruct((B, 1), jnp.float32),
        grid_spec=pltpu.PrefetchScalarGridSpec(
            num_scalar_prefetch=0,
            grid=(1,),                         # single invocation; loop is in-kernel
            in_specs=[
                pl.BlockSpec((T * B, I), lambda i: (0, 0)),
                pl.BlockSpec((3 * H, 4 * H), lambda i: (0, 0)),
                pl.BlockSpec((I + 4, 4 * H), lambda i: (0, 0)),
            ],
            out_specs=pl.BlockSpec((B, 1), lambda i: (0, 0)),
        ),
        compiler_params=pltpu.CompilerParams(
            dimension_semantics=("arbitrary",)),
    )(x_flat, w_slab, s_slab)
    return out


def init_params(key, input_size=1, hidden_size=64):
    """Deterministic params mirroring nn.LSTM/nn.Linear shapes.
    Stored pre-transposed: W_ih -> (in, 4H), W_hh -> (H, 4H),
    b = b_ih + b_hh -> (1, 4H), fc weight -> (H, 1), fc bias -> (1, 1)."""
    H = hidden_size
    k = 1.0 / jnp.sqrt(jnp.float32(H))
    keys = jax.random.split(key, 10)

    def u(kk, shape):
        return jax.random.uniform(kk, shape, jnp.float32, -k, k)

    params = {
        "wih0": u(keys[0], (input_size, 4 * H)),
        "whh0": u(keys[1], (H, 4 * H)),
        "b0":   (u(keys[2], (1, 4 * H)) + u(keys[3], (1, 4 * H))),
        "wih1": u(keys[4], (H, 4 * H)),
        "whh1": u(keys[5], (H, 4 * H)),
        "b1":   (u(keys[6], (1, 4 * H)) + u(keys[7], (1, 4 * H))),
        "fcw":  u(keys[8], (H, 1)),
        "fcb":  u(keys[9], (1, 1)),
    }
    return params


def reference_forward(x, params):
    """Pure-JAX f32 reference matching the PyTorch module semantics."""
    if x.ndim == 2:
        x = x[..., None]
    B, T, I = x.shape
    H = params["whh0"].shape[0]

    def cell(x_t, h, c, wih, whh, b):
        g = x_t @ wih + h @ whh + b
        i = jax.nn.sigmoid(g[:, 0 * H:1 * H])
        f = jax.nn.sigmoid(g[:, 1 * H:2 * H])
        gg = jnp.tanh(g[:, 2 * H:3 * H])
        o = jax.nn.sigmoid(g[:, 3 * H:4 * H])
        c = f * c + i * gg
        h = o * jnp.tanh(c)
        return h, c

    h0 = c0 = h1 = c1 = jnp.zeros((B, H), jnp.float32)

    def step(carry, x_t):
        h0, c0, h1, c1 = carry
        h0, c0 = cell(x_t, h0, c0, params["wih0"], params["whh0"], params["b0"])
        h1, c1 = cell(h0, h1, c1, params["wih1"], params["whh1"], params["b1"])
        return (h0, c0, h1, c1), None

    (h0, c0, h1, c1), _ = jax.lax.scan(step, (h0, c0, h1, c1),
                                       jnp.transpose(x, (1, 0, 2)))
    return h1 @ params["fcw"] + params["fcb"]


if __name__ == "__main__":
    key = jax.random.PRNGKey(0)
    k_x, k_p = jax.random.split(key)

    B, T, INPUT_SIZE, HIDDEN = 2, 8, 1, 64
    x = jax.random.normal(k_x, (B, T, INPUT_SIZE), jnp.float32)
    params = init_params(k_p, input_size=INPUT_SIZE, hidden_size=HIDDEN)

    out = lstm_model_forward(x, params)
    out = jax.block_until_ready(out)

    ref = reference_forward(x, params)
    assert out.shape == (B, 1)
    # Tolerance relaxed vs the pure-f32 version: matmul operands are bf16
    # (f32 accumulation), per the performance review.
    assert jnp.allclose(out, ref, atol=5e-2, rtol=5e-2), (out, ref)

    print("KERNEL_OK")
</pallas_src>

<mosaic_0001>
module attributes {stable_mosaic.version = 11 : i64} {
  func.func @lstm_kernel(%arg0: i32, %arg1: memref<16x1xf32, #tpu.memory_space<vmem>>, %arg2: memref<192x256xbf16, #tpu.memory_space<vmem>>, %arg3: memref<5x256xf32, #tpu.memory_space<vmem>>, %arg4: memref<2x1xf32, #tpu.memory_space<vmem>>) attributes {dimension_semantics = [#tpu.dimension_semantics<arbitrary>], iteration_bounds = array<i64: 1>, scalar_prefetch = 0 : i64, scratch_operands = 0 : i64, tpu.core_type = #tpu.core_type<tc>, window_params = [{pipeline_mode = #tpu.pipeline_mode<synchronous>, transform_indices = @transform_0, window_bounds = array<i64: 16, 1>}, {pipeline_mode = #tpu.pipeline_mode<synchronous>, transform_indices = @transform_1, window_bounds = array<i64: 192, 256>}, {pipeline_mode = #tpu.pipeline_mode<synchronous>, transform_indices = @transform_2, window_bounds = array<i64: 5, 256>}, {pipeline_mode = #tpu.pipeline_mode<synchronous>, transform_indices = @transform_3, window_bounds = array<i64: 2, 1>}]} {
    %c0 = arith.constant 0 : index
    %c0_0 = arith.constant 0 : index
    %0 = vector.load %arg3[%c0, %c0_0] : memref<5x256xf32, #tpu.memory_space<vmem>>, vector<1x256xf32>
    %c1 = arith.constant 1 : index
    %c0_1 = arith.constant 0 : index
    %1 = vector.load %arg3[%c1, %c0_1] : memref<5x256xf32, #tpu.memory_space<vmem>>, vector<1x256xf32>
    %c0_2 = arith.constant 0 : index
    %c0_3 = arith.constant 0 : index
    %2 = vector.load %arg1[%c0_2, %c0_3] : memref<16x1xf32, #tpu.memory_space<vmem>>, vector<16x1xf32>
    %3 = vector.broadcast %2 : vector<16x1xf32> to vector<16x256xf32>
    %4 = vector.broadcast %0 : vector<1x256xf32> to vector<16x256xf32>
    %5 = arith.mulf %3, %4 : vector<16x256xf32>
    %6 = vector.broadcast %1 : vector<1x256xf32> to vector<16x256xf32>
    %7 = arith.addf %5, %6 : vector<16x256xf32>
    %c2 = arith.constant 2 : index
    %c0_4 = arith.constant 0 : index
    %8 = vector.load %arg3[%c2, %c0_4] : memref<5x256xf32, #tpu.memory_space<vmem>>, vector<1x256xf32>
    %9 = vector.shape_cast %8 : vector<1x256xf32> to vector<1x256xf32>
    %10 = vector.broadcast %9 : vector<1x256xf32> to vector<2x256xf32>
    %cst = arith.constant 0.000000e+00 : f32
    %11 = vector.broadcast %cst : f32 to vector<2x64xf32>
    %cst_5 = arith.constant 0.000000e+00 : f32
    %12 = vector.broadcast %cst_5 : f32 to vector<2x64xf32>
    %cst_6 = arith.constant 0.000000e+00 : f32
    %13 = vector.broadcast %cst_6 : f32 to vector<2x64xf32>
    %cst_7 = arith.constant 0.000000e+00 : f32
    %14 = vector.broadcast %cst_7 : f32 to vector<2x64xf32>
    %15 = vector.extract_strided_slice %7 {offsets = [0, 0], sizes = [2, 256], strides = [1, 1]} : vector<16x256xf32> to vector<2x256xf32>
    %16 = arith.truncf %13 : vector<2x64xf32> to vector<2x64xbf16>
    %c128 = arith.constant 128 : index
    %c0_8 = arith.constant 0 : index
    %17 = vector.load %arg2[%c128, %c0_8] : memref<192x256xbf16, #tpu.memory_space<vmem>>, vector<64x256xbf16>
    %cst_9 = arith.constant dense<0.000000e+00> : vector<2x256xf32>
    %18 = tpu.matmul %16, %17, %cst_9 {dimension_numbers = #tpu.dot_dimension_numbers<[1], [0], [0], [1], [0, 0, 1, 1], [], []>} : vector<2x64xbf16>, vector<64x256xbf16>, vector<2x256xf32> -> vector<2x256xf32>
    %19 = arith.truncf %11 : vector<2x64xf32> to vector<2x64xbf16>
    %c0_10 = arith.constant 0 : index
    %c0_11 = arith.constant 0 : index
    %20 = vector.load %arg2[%c0_10, %c0_11] : memref<192x256xbf16, #tpu.memory_space<vmem>>, vector<64x256xbf16>
    %cst_12 = arith.constant dense<0.000000e+00> : vector<2x256xf32>
    %21 = tpu.matmul %19, %20, %cst_12 {dimension_numbers = #tpu.dot_dimension_numbers<[1], [0], [0], [1], [0, 0, 1, 1], [], []>} : vector<2x64xbf16>, vector<64x256xbf16>, vector<2x256xf32> -> vector<2x256xf32>
    %22 = arith.addf %21, %15 : vector<2x256xf32>
    %23 = vector.extract_strided_slice %22 {offsets = [0, 0], sizes = [2, 64], strides = [1, 1]} : vector<2x256xf32> to vector<2x64xf32>
    %cst_13 = arith.constant 5.000000e-01 : f32
    %24 = vector.broadcast %cst_13 : f32 to vector<2x64xf32>
    %25 = arith.mulf %24, %23 : vector<2x64xf32>
    %26 = math.tanh %25 : vector<2x64xf32>
    %cst_14 = arith.constant 5.000000e-01 : f32
    %27 = vector.broadcast %cst_14 : f32 to vector<2x64xf32>
    %28 = arith.mulf %27, %26 : vector<2x64xf32>
    %cst_15 = arith.constant 5.000000e-01 : f32
    %29 = vector.broadcast %cst_15 : f32 to vector<2x64xf32>
    %30 = arith.addf %28, %29 : vector<2x64xf32>
    %31 = vector.extract_strided_slice %22 {offsets = [0, 64], sizes = [2, 64], strides = [1, 1]} : vector<2x256xf32> to vector<2x64xf32>
    %cst_16 = arith.constant 5.000000e-01 : f32
    %32 = vector.broadcast %cst_16 : f32 to vector<2x64xf32>
    %33 = arith.mulf %32, %31 : vector<2x64xf32>
    %34 = math.tanh %33 : vector<2x64xf32>
    %cst_17 = arith.constant 5.000000e-01 : f32
    %35 = vector.broadcast %cst_17 : f32 to vector<2x64xf32>
    %36 = arith.mulf %35, %34 : vector<2x64xf32>
    %cst_18 = arith.constant 5.000000e-01 : f32
    %37 = vector.broadcast %cst_18 : f32 to vector<2x64xf32>
    %38 = arith.addf %36, %37 : vector<2x64xf32>
    %39 = vector.extract_strided_slice %22 {offsets = [0, 128], sizes = [2, 64], strides = [1, 1]} : vector<2x256xf32> to vector<2x64xf32>
    %40 = math.tanh %39 : vector<2x64xf32>
    %41 = vector.extract_strided_slice %22 {offsets = [0, 192], sizes = [2, 64], strides = [1, 1]} : vector<2x256xf32> to vector<2x64xf32>
    %cst_19 = arith.constant 5.000000e-01 : f32
    %42 = vector.broadcast %cst_19 : f32 to vector<2x64xf32>
    %43 = arith.mulf %42, %41 : vector<2x64xf32>
    %44 = math.tanh %43 : vector<2x64xf32>
    %cst_20 = arith.constant 5.000000e-01 : f32
    %45 = vector.broadcast %cst_20 : f32 to vector<2x64xf32>
    %46 = arith.mulf %45, %44 : vector<2x64xf32>
    %cst_21 = arith.constant 5.000000e-01 : f32
    %47 = vector.broadcast %cst_21 : f32 to vector<2x64xf32>
    %48 = arith.addf %46, %47 : vector<2x64xf32>
    %49 = arith.mulf %38, %12 : vector<2x64xf32>
    %50 = arith.mulf %30, %40 : vector<2x64xf32>
    %51 = arith.addf %49, %50 : vector<2x64xf32>
    %52 = math.tanh %51 : vector<2x64xf32>
    %53 = arith.mulf %48, %52 : vector<2x64xf32>
    %54 = arith.truncf %53 : vector<2x64xf32> to vector<2x64xbf16>
    %c64 = arith.constant 64 : index
    %c0_22 = arith.constant 0 : index
    %55 = vector.load %arg2[%c64, %c0_22] : memref<192x256xbf16, #tpu.memory_space<vmem>>, vector<64x256xbf16>
    %cst_23 = arith.constant dense<0.000000e+00> : vector<2x256xf32>
    %56 = tpu.matmul %54, %55, %cst_23 {dimension_numbers = #tpu.dot_dimension_numbers<[1], [0], [0], [1], [0, 0, 1, 1], [], []>} : vector<2x64xbf16>, vector<64x256xbf16>, vector<2x256xf32> -> vector<2x256xf32>
    %57 = arith.addf %56, %18 : vector<2x256xf32>
    %58 = arith.addf %57, %10 : vector<2x256xf32>
    %59 = vector.extract_strided_slice %58 {offsets = [0, 0], sizes = [2, 64], strides = [1, 1]} : vector<2x256xf32> to vector<2x64xf32>
    %cst_24 = arith.constant 5.000000e-01 : f32
    %60 = vector.broadcast %cst_24 : f32 to vector<2x64xf32>
    %61 = arith.mulf %60, %59 : vector<2x64xf32>
    %62 = math.tanh %61 : vector<2x64xf32>
    %cst_25 = arith.constant 5.000000e-01 : f32
    %63 = vector.broadcast %cst_25 : f32 to vector<2x64xf32>
    %64 = arith.mulf %63, %62 : vector<2x64xf32>
    %cst_26 = arith.constant 5.000000e-01 : f32
    %65 = vector.broadcast %cst_26 : f32 to vector<2x64xf32>
    %66 = arith.addf %64, %65 : vector<2x64xf32>
    %67 = vector.extract_strided_slice %58 {offsets = [0, 64], sizes = [2, 64], strides = [1, 1]} : vector<2x256xf32> to vector<2x64xf32>
    %cst_27 = arith.constant 5.000000e-01 : f32
    %68 = vector.broadcast %cst_27 : f32 to vector<2x64xf32>
    %69 = arith.mulf %68, %67 : vector<2x64xf32>
    %70 = math.tanh %69 : vector<2x64xf32>
    %cst_28 = arith.constant 5.000000e-01 : f32
    %71 = vector.broadcast %cst_28 : f32 to vector<2x64xf32>
    %72 = arith.mulf %71, %70 : vector<2x64xf32>
    %cst_29 = arith.constant 5.000000e-01 : f32
    %73 = vector.broadcast %cst_29 : f32 to vector<2x64xf32>
    %74 = arith.addf %72, %73 : vector<2x64xf32>
    %75 = vector.extract_strided_slice %58 {offsets = [0, 128], sizes = [2, 64], strides = [1, 1]} : vector<2x256xf32> to vector<2x64xf32>
    %76 = math.tanh %75 : vector<2x64xf32>
    %77 = vector.extract_strided_slice %58 {offsets = [0, 192], sizes = [2, 64], strides = [1, 1]} : vector<2x256xf32> to vector<2x64xf32>
    %cst_30 = arith.constant 5.000000e-01 : f32
    %78 = vector.broadcast %cst_30 : f32 to vector<2x64xf32>
    %79 = arith.mulf %78, %77 : vector<2x64xf32>
    %80 = math.tanh %79 : vector<2x64xf32>
    %cst_31 = arith.constant 5.000000e-01 : f32
    %81 = vector.broadcast %cst_31 : f32 to vector<2x64xf32>
    %82 = arith.mulf %81, %80 : vector<2x64xf32>
    %cst_32 = arith.constant 5.000000e-01 : f32
    %83 = vector.broadcast %cst_32 : f32 to vector<2x64xf32>
    %84 = arith.addf %82, %83 : vector<2x64xf32>
    %85 = arith.mulf %74, %14 : vector<2x64xf32>
    %86 = arith.mulf %66, %76 : vector<2x64xf32>
    %87 = arith.addf %85, %86 : vector<2x64xf32>
    %88 = math.tanh %87 : vector<2x64xf32>
    %89 = arith.mulf %84, %88 : vector<2x64xf32>
    %90 = vector.extract_strided_slice %7 {offsets = [2, 0], sizes = [2, 256], strides = [1, 1]} : vector<16x256xf32> to vector<2x256xf32>
    %91 = arith.truncf %89 : vector<2x64xf32> to vector<2x64xbf16>
    %c128_33 = arith.constant 128 : index
    %c0_34 = arith.constant 0 : index
    %92 = vector.load %arg2[%c128_33, %c0_34] : memref<192x256xbf16, #tpu.memory_space<vmem>>, vector<64x256xbf16>
    %cst_35 = arith.constant dense<0.000000e+00> : vector<2x256xf32>
    %93 = tpu.matmul %91, %92, %cst_35 {dimension_numbers = #tpu.dot_dimension_numbers<[1], [0], [0], [1], [0, 0, 1, 1], [], []>} : vector<2x64xbf16>, vector<64x256xbf16>, vector<2x256xf32> -> vector<2x256xf32>
    %94 = arith.truncf %53 : vector<2x64xf32> to vector<2x64xbf16>
    %c0_36 = arith.constant 0 : index
    %c0_37 = arith.constant 0 : index
    %95 = vector.load %arg2[%c0_36, %c0_37] : memref<192x256xbf16, #tpu.memory_space<vmem>>, vector<64x256xbf16>
    %cst_38 = arith.constant dense<0.000000e+00> : vector<2x256xf32>
    %96 = tpu.matmul %94, %95, %cst_38 {dimension_numbers = #tpu.dot_dimension_numbers<[1], [0], [0], [1], [0, 0, 1, 1], [], []>} : vector<2x64xbf16>, vector<64x256xbf16>, vector<2x256xf32> -> vector<2x256xf32>
    %97 = arith.addf %96, %90 : vector<2x256xf32>
    %98 = vector.extract_strided_slice %97 {offsets = [0, 0], sizes = [2, 64], strides = [1, 1]} : vector<2x256xf32> to vector<2x64xf32>
    %cst_39 = arith.constant 5.000000e-01 : f32
    %99 = vector.broadcast %cst_39 : f32 to vector<2x64xf32>
    %100 = arith.mulf %99, %98 : vector<2x64xf32>
    %101 = math.tanh %100 : vector<2x64xf32>
    %cst_40 = arith.constant 5.000000e-01 : f32
    %102 = vector.broadcast %cst_40 : f32 to vector<2x64xf32>
    %103 = arith.mulf %102, %101 : vector<2x64xf32>
    %cst_41 = arith.constant 5.000000e-01 : f32
    %104 = vector.broadcast %cst_41 : f32 to vector<2x64xf32>
    %105 = arith.addf %103, %104 : vector<2x64xf32>
    %106 = vector.extract_strided_slice %97 {offsets = [0, 64], sizes = [2, 64], strides = [1, 1]} : vector<2x256xf32> to vector<2x64xf32>
    %cst_42 = arith.constant 5.000000e-01 : f32
    %107 = vector.broadcast %cst_42 : f32 to vector<2x64xf32>
    %108 = arith.mulf %107, %106 : vector<2x64xf32>
    %109 = math.tanh %108 : vector<2x64xf32>
    %cst_43 = arith.constant 5.000000e-01 : f32
    %110 = vector.broadcast %cst_43 : f32 to vector<2x64xf32>
    %111 = arith.mulf %110, %109 : vector<2x64xf32>
    %cst_44 = arith.constant 5.000000e-01 : f32
    %112 = vector.broadcast %cst_44 : f32 to vector<2x64xf32>
    %113 = arith.addf %111, %112 : vector<2x64xf32>
    %114 = vector.extract_strided_slice %97 {offsets = [0, 128], sizes = [2, 64], strides = [1, 1]} : vector<2x256xf32> to vector<2x64xf32>
    %115 = math.tanh %114 : vector<2x64xf32>
    %116 = vector.extract_strided_slice %97 {offsets = [0, 192], sizes = [2, 64], strides = [1, 1]} : vector<2x256xf32> to vector<2x64xf32>
    %cst_45 = arith.constant 5.000000e-01 : f32
    %117 = vector.broadcast %cst_45 : f32 to vector<2x64xf32>
    %118 = arith.mulf %117, %116 : vector<2x64xf32>
    %119 = math.tanh %118 : vector<2x64xf32>
    %cst_46 = arith.constant 5.000000e-01 : f32
    %120 = vector.broadcast %cst_46 : f32 to vector<2x64xf32>
    %121 = arith.mulf %120, %119 : vector<2x64xf32>
    %cst_47 = arith.constant 5.000000e-01 : f32
    %122 = vector.broadcast %cst_47 : f32 to vector<2x64xf32>
    %123 = arith.addf %121, %122 : vector<2x64xf32>
    %124 = arith.mulf %113, %51 : vector<2x64xf32>
    %125 = arith.mulf %105, %115 : vector<2x64xf32>
    %126 = arith.addf %124, %125 : vector<2x64xf32>
    %127 = math.tanh %126 : vector<2x64xf32>
    %128 = arith.mulf %123, %127 : vector<2x64xf32>
    %129 = arith.truncf %128 : vector<2x64xf32> to vector<2x64xbf16>
    %c64_48 = arith.constant 64 : index
    %c0_49 = arith.constant 0 : index
    %130 = vector.load %arg2[%c64_48, %c0_49] : memref<192x256xbf16, #tpu.memory_space<vmem>>, vector<64x256xbf16>
    %cst_50 = arith.constant dense<0.000000e+00> : vector<2x256xf32>
    %131 = tpu.matmul %129, %130, %cst_50 {dimension_numbers = #tpu.dot_dimension_numbers<[1], [0], [0], [1], [0, 0, 1, 1], [], []>} : vector<2x64xbf16>, vector<64x256xbf16>, vector<2x256xf32> -> vector<2x256xf32>
    %132 = arith.addf %131, %93 : vector<2x256xf32>
    %133 = arith.addf %132, %10 : vector<2x256xf32>
    %134 = vector.extract_strided_slice %133 {offsets = [0, 0], sizes = [2, 64], strides = [1, 1]} : vector<2x256xf32> to vector<2x64xf32>
    %cst_51 = arith.constant 5.000000e-01 : f32
    %135 = vector.broadcast %cst_51 : f32 to vector<2x64xf32>
    %136 = arith.mulf %135, %134 : vector<2x64xf32>
    %137 = math.tanh %136 : vector<2x64xf32>
    %cst_52 = arith.constant 5.000000e-01 : f32
    %138 = vector.broadcast %cst_52 : f32 to vector<2x64xf32>
    %139 = arith.mulf %138, %137 : vector<2x64xf32>
    %cst_53 = arith.constant 5.000000e-01 : f32
    %140 = vector.broadcast %cst_53 : f32 to vector<2x64xf32>
    %141 = arith.addf %139, %140 : vector<2x64xf32>
    %142 = vector.extract_strided_slice %133 {offsets = [0, 64], sizes = [2, 64], strides = [1, 1]} : vector<2x256xf32> to vector<2x64xf32>
    %cst_54 = arith.constant 5.000000e-01 : f32
    %143 = vector.broadcast %cst_54 : f32 to vector<2x64xf32>
    %144 = arith.mulf %143, %142 : vector<2x64xf32>
    %145 = math.tanh %144 : vector<2x64xf32>
    %cst_55 = arith.constant 5.000000e-01 : f32
    %146 = vector.broadcast %cst_55 : f32 to vector<2x64xf32>
    %147 = arith.mulf %146, %145 : vector<2x64xf32>
    %cst_56 = arith.constant 5.000000e-01 : f32
    %148 = vector.broadcast %cst_56 : f32 to vector<2x64xf32>
    %149 = arith.addf %147, %148 : vector<2x64xf32>
    %150 = vector.extract_strided_slice %133 {offsets = [0, 128], sizes = [2, 64], strides = [1, 1]} : vector<2x256xf32> to vector<2x64xf32>
    %151 = math.tanh %150 : vector<2x64xf32>
    %152 = vector.extract_strided_slice %133 {offsets = [0, 192], sizes = [2, 64], strides = [1, 1]} : vector<2x256xf32> to vector<2x64xf32>
    %cst_57 = arith.constant 5.000000e-01 : f32
    %153 = vector.broadcast %cst_57 : f32 to vector<2x64xf32>
    %154 = arith.mulf %153, %152 : vector<2x64xf32>
    %155 = math.tanh %154 : vector<2x64xf32>
    %cst_58 = arith.constant 5.000000e-01 : f32
    %156 = vector.broadcast %cst_58 : f32 to vector<2x64xf32>
    %157 = arith.mulf %156, %155 : vector<2x64xf32>
    %cst_59 = arith.constant 5.000000e-01 : f32
    %158 = vector.broadcast %cst_59 : f32 to vector<2x64xf32>
    %159 = arith.addf %157, %158 : vector<2x64xf32>
    %160 = arith.mulf %149, %87 : vector<2x64xf32>
    %161 = arith.mulf %141, %151 : vector<2x64xf32>
    %162 = arith.addf %160, %161 : vector<2x64xf32>
    %163 = math.tanh %162 : vector<2x64xf32>
    %164 = arith.mulf %159, %163 : vector<2x64xf32>
    %165 = vector.extract_strided_slice %7 {offsets = [4, 0], sizes = [2, 256], strides = [1, 1]} : vector<16x256xf32> to vector<2x256xf32>
    %166 = arith.truncf %164 : vector<2x64xf32> to vector<2x64xbf16>
    %c128_60 = arith.constant 128 : index
    %c0_61 = arith.constant 0 : index
    %167 = vector.load %arg2[%c128_60, %c0_61] : memref<192x256xbf16, #tpu.memory_space<vmem>>, vector<64x256xbf16>
    %cst_62 = arith.constant dense<0.000000e+00> : vector<2x256xf32>
    %168 = tpu.matmul %166, %167, %cst_62 {dimension_numbers = #tpu.dot_dimension_numbers<[1], [0], [0], [1], [0, 0, 1, 1], [], []>} : vector<2x64xbf16>, vector<64x256xbf16>, vector<2x256xf32> -> vector<2x256xf32>
    %169 = arith.truncf %128 : vector<2x64xf32> to vector<2x64xbf16>
    %c0_63 = arith.constant 0 : index
    %c0_64 = arith.constant 0 : index
    %170 = vector.load %arg2[%c0_63, %c0_64] : memref<192x256xbf16, #tpu.memory_space<vmem>>, vector<64x256xbf16>
    %cst_65 = arith.constant dense<0.000000e+00> : vector<2x256xf32>
    %171 = tpu.matmul %169, %170, %cst_65 {dimension_numbers = #tpu.dot_dimension_numbers<[1], [0], [0], [1], [0, 0, 1, 1], [], []>} : vector<2x64xbf16>, vector<64x256xbf16>, vector<2x256xf32> -> vector<2x256xf32>
    %172 = arith.addf %171, %165 : vector<2x256xf32>
    %173 = vector.extract_strided_slice %172 {offsets = [0, 0], sizes = [2, 64], strides = [1, 1]} : vector<2x256xf32> to vector<2x64xf32>
    %cst_66 = arith.constant 5.000000e-01 : f32
    %174 = vector.broadcast %cst_66 : f32 to vector<2x64xf32>
    %175 = arith.mulf %174, %173 : vector<2x64xf32>
    %176 = math.tanh %175 : vector<2x64xf32>
    %cst_67 = arith.constant 5.000000e-01 : f32
    %177 = vector.broadcast %cst_67 : f32 to vector<2x64xf32>
    %178 = arith.mulf %177, %176 : vector<2x64xf32>
    %cst_68 = arith.constant 5.000000e-01 : f32
    %179 = vector.broadcast %cst_68 : f32 to vector<2x64xf32>
    %180 = arith.addf %178, %179 : vector<2x64xf32>
    %181 = vector.extract_strided_slice %172 {offsets = [0, 64], sizes = [2, 64], strides = [1, 1]} : vector<2x256xf32> to vector<2x64xf32>
    %cst_69 = arith.constant 5.000000e-01 : f32
    %182 = vector.broadcast %cst_69 : f32 to vector<2x64xf32>
    %183 = arith.mulf %182, %181 : vector<2x64xf32>
    %184 = math.tanh %183 : vector<2x64xf32>
    %cst_70 = arith.constant 5.000000e-01 : f32
    %185 = vector.broadcast %cst_70 : f32 to vector<2x64xf32>
    %186 = arith.mulf %185, %184 : vector<2x64xf32>
    %cst_71 = arith.constant 5.000000e-01 : f32
    %187 = vector.broadcast %cst_71 : f32 to vector<2x64xf32>
    %188 = arith.addf %186, %187 : vector<2x64xf32>
    %189 = vector.extract_strided_slice %172 {offsets = [0, 128], sizes = [2, 64], strides = [1, 1]} : vector<2x256xf32> to vector<2x64xf32>
    %190 = math.tanh %189 : vector<2x64xf32>
    %191 = vector.extract_strided_slice %172 {offsets = [0, 192], sizes = [2, 64], strides = [1, 1]} : vector<2x256xf32> to vector<2x64xf32>
    %cst_72 = arith.constant 5.000000e-01 : f32
    %192 = vector.broadcast %cst_72 : f32 to vector<2x64xf32>
    %193 = arith.mulf %192, %191 : vector<2x64xf32>
    %194 = math.tanh %193 : vector<2x64xf32>
    %cst_73 = arith.constant 5.000000e-01 : f32
    %195 = vector.broadcast %cst_73 : f32 to vector<2x64xf32>
    %196 = arith.mulf %195, %194 : vector<2x64xf32>
    %cst_74 = arith.constant 5.000000e-01 : f32
    %197 = vector.broadcast %cst_74 : f32 to vector<2x64xf32>
    %198 = arith.addf %196, %197 : vector<2x64xf32>
    %199 = arith.mulf %188, %126 : vector<2x64xf32>
    %200 = arith.mulf %180, %190 : vector<2x64xf32>
    %201 = arith.addf %199, %200 : vector<2x64xf32>
    %202 = math.tanh %201 : vector<2x64xf32>
    %203 = arith.mulf %198, %202 : vector<2x64xf32>
    %204 = arith.truncf %203 : vector<2x64xf32> to vector<2x64xbf16>
    %c64_75 = arith.constant 64 : index
    %c0_76 = arith.constant 0 : index
    %205 = vector.load %arg2[%c64_75, %c0_76] : memref<192x256xbf16, #tpu.memory_space<vmem>>, vector<64x256xbf16>
    %cst_77 = arith.constant dense<0.000000e+00> : vector<2x256xf32>
    %206 = tpu.matmul %204, %205, %cst_77 {dimension_numbers = #tpu.dot_dimension_numbers<[1], [0], [0], [1], [0, 0, 1, 1], [], []>} : vector<2x64xbf16>, vector<64x256xbf16>, vector<2x256xf32> -> vector<2x256xf32>
    %207 = arith.addf %206, %168 : vector<2x256xf32>
    %208 = arith.addf %207, %10 : vector<2x256xf32>
    %209 = vector.extract_strided_slice %208 {offsets = [0, 0], sizes = [2, 64], strides = [1, 1]} : vector<2x256xf32> to vector<2x64xf32>
    %cst_78 = arith.constant 5.000000e-01 : f32
    %210 = vector.broadcast %cst_78 : f32 to vector<2x64xf32>
    %211 = arith.mulf %210, %209 : vector<2x64xf32>
    %212 = math.tanh %211 : vector<2x64xf32>
    %cst_79 = arith.constant 5.000000e-01 : f32
    %213 = vector.broadcast %cst_79 : f32 to vector<2x64xf32>
    %214 = arith.mulf %213, %212 : vector<2x64xf32>
    %cst_80 = arith.constant 5.000000e-01 : f32
    %215 = vector.broadcast %cst_80 : f32 to vector<2x64xf32>
    %216 = arith.addf %214, %215 : vector<2x64xf32>
    %217 = vector.extract_strided_slice %208 {offsets = [0, 64], sizes = [2, 64], strides = [1, 1]} : vector<2x256xf32> to vector<2x64xf32>
    %cst_81 = arith.constant 5.000000e-01 : f32
    %218 = vector.broadcast %cst_81 : f32 to vector<2x64xf32>
    %219 = arith.mulf %218, %217 : vector<2x64xf32>
    %220 = math.tanh %219 : vector<2x64xf32>
    %cst_82 = arith.constant 5.000000e-01 : f32
    %221 = vector.broadcast %cst_82 : f32 to vector<2x64xf32>
    %222 = arith.mulf %221, %220 : vector<2x64xf32>
    %cst_83 = arith.constant 5.000000e-01 : f32
    %223 = vector.broadcast %cst_83 : f32 to vector<2x64xf32>
    %224 = arith.addf %222, %223 : vector<2x64xf32>
    %225 = vector.extract_strided_slice %208 {offsets = [0, 128], sizes = [2, 64], strides = [1, 1]} : vector<2x256xf32> to vector<2x64xf32>
    %226 = math.tanh %225 : vector<2x64xf32>
    %227 = vector.extract_strided_slice %208 {offsets = [0, 192], sizes = [2, 64], strides = [1, 1]} : vector<2x256xf32> to vector<2x64xf32>
    %cst_84 = arith.constant 5.000000e-01 : f32
    %228 = vector.broadcast %cst_84 : f32 to vector<2x64xf32>
    %229 = arith.mulf %228, %227 : vector<2x64xf32>
    %230 = math.tanh %229 : vector<2x64xf32>
    %cst_85 = arith.constant 5.000000e-01 : f32
    %231 = vector.broadcast %cst_85 : f32 to vector<2x64xf32>
    %232 = arith.mulf %231, %230 : vector<2x64xf32>
    %cst_86 = arith.constant 5.000000e-01 : f32
    %233 = vector.broadcast %cst_86 : f32 to vector<2x64xf32>
    %234 = arith.addf %232, %233 : vector<2x64xf32>
    %235 = arith.mulf %224, %162 : vector<2x64xf32>
    %236 = arith.mulf %216, %226 : vector<2x64xf32>
    %237 = arith.addf %235, %236 : vector<2x64xf32>
    %238 = math.tanh %237 : vector<2x64xf32>
    %239 = arith.mulf %234, %238 : vector<2x64xf32>
    %240 = vector.extract_strided_slice %7 {offsets = [6, 0], sizes = [2, 256], strides = [1, 1]} : vector<16x256xf32> to vector<2x256xf32>
    %241 = arith.truncf %239 : vector<2x64xf32> to vector<2x64xbf16>
    %c128_87 = arith.constant 128 : index
    %c0_88 = arith.constant 0 : index
    %242 = vector.load %arg2[%c128_87, %c0_88] : memref<192x256xbf16, #tpu.memory_space<vmem>>, vector<64x256xbf16>
    %cst_89 = arith.constant dense<0.000000e+00> : vector<2x256xf32>
    %243 = tpu.matmul %241, %242, %cst_89 {dimension_numbers = #tpu.dot_dimension_numbers<[1], [0], [0], [1], [0, 0, 1, 1], [], []>} : vector<2x64xbf16>, vector<64x256xbf16>, vector<2x256xf32> -> vector<2x256xf32>
    %244 = arith.truncf %203 : vector<2x64xf32> to vector<2x64xbf16>
    %c0_90 = arith.constant 0 : index
    %c0_91 = arith.constant 0 : index
    %245 = vector.load %arg2[%c0_90, %c0_91] : memref<192x256xbf16, #tpu.memory_space<vmem>>, vector<64x256xbf16>
    %cst_92 = arith.constant dense<0.000000e+00> : vector<2x256xf32>
    %246 = tpu.matmul %244, %245, %cst_92 {dimension_numbers = #tpu.dot_dimension_numbers<[1], [0], [0], [1], [0, 0, 1, 1], [], []>} : vector<2x64xbf16>, vector<64x256xbf16>, vector<2x256xf32> -> vector<2x256xf32>
    %247 = arith.addf %246, %240 : vector<2x256xf32>
    %248 = vector.extract_strided_slice %247 {offsets = [0, 0], sizes = [2, 64], strides = [1, 1]} : vector<2x256xf32> to vector<2x64xf32>
    %cst_93 = arith.constant 5.000000e-01 : f32
    %249 = vector.broadcast %cst_93 : f32 to vector<2x64xf32>
    %250 = arith.mulf %249, %248 : vector<2x64xf32>
    %251 = math.tanh %250 : vector<2x64xf32>
    %cst_94 = arith.constant 5.000000e-01 : f32
    %252 = vector.broadcast %cst_94 : f32 to vector<2x64xf32>
    %253 = arith.mulf %252, %251 : vector<2x64xf32>
    %cst_95 = arith.constant 5.000000e-01 : f32
    %254 = vector.broadcast %cst_95 : f32 to vector<2x64xf32>
    %255 = arith.addf %253, %254 : vector<2x64xf32>
    %256 = vector.extract_strided_slice %247 {offsets = [0, 64], sizes = [2, 64], strides = [1, 1]} : vector<2x256xf32> to vector<2x64xf32>
    %cst_96 = arith.constant 5.000000e-01 : f32
    %257 = vector.broadcast %cst_96 : f32 to vector<2x64xf32>
    %258 = arith.mulf %257, %256 : vector<2x64xf32>
    %259 = math.tanh %258 : vector<2x64xf32>
    %cst_97 = arith.constant 5.000000e-01 : f32
    %260 = vector.broadcast %cst_97 : f32 to vector<2x64xf32>
    %261 = arith.mulf %260, %259 : vector<2x64xf32>
    %cst_98 = arith.constant 5.000000e-01 : f32
    %262 = vector.broadcast %cst_98 : f32 to vector<2x64xf32>
    %263 = arith.addf %261, %262 : vector<2x64xf32>
    %264 = vector.extract_strided_slice %247 {offsets = [0, 128], sizes = [2, 64], strides = [1, 1]} : vector<2x256xf32> to vector<2x64xf32>
    %265 = math.tanh %264 : vector<2x64xf32>
    %266 = vector.extract_strided_slice %247 {offsets = [0, 192], sizes = [2, 64], strides = [1, 1]} : vector<2x256xf32> to vector<2x64xf32>
    %cst_99 = arith.constant 5.000000e-01 : f32
    %267 = vector.broadcast %cst_99 : f32 to vector<2x64xf32>
    %268 = arith.mulf %267, %266 : vector<2x64xf32>
    %269 = math.tanh %268 : vector<2x64xf32>
    %cst_100 = arith.constant 5.000000e-01 : f32
    %270 = vector.broadcast %cst_100 : f32 to vector<2x64xf32>
    %271 = arith.mulf %270, %269 : vector<2x64xf32>
    %cst_101 = arith.constant 5.000000e-01 : f32
    %272 = vector.broadcast %cst_101 : f32 to vector<2x64xf32>
    %273 = arith.addf %271, %272 : vector<2x64xf32>
    %274 = arith.mulf %263, %201 : vector<2x64xf32>
    %275 = arith.mulf %255, %265 : vector<2x64xf32>
    %276 = arith.addf %274, %275 : vector<2x64xf32>
    %277 = math.tanh %276 : vector<2x64xf32>
    %278 = arith.mulf %273, %277 : vector<2x64xf32>
    %279 = arith.truncf %278 : vector<2x64xf32> to vector<2x64xbf16>
    %c64_102 = arith.constant 64 : index
    %c0_103 = arith.constant 0 : index
    %280 = vector.load %arg2[%c64_102, %c0_103] : memref<192x256xbf16, #tpu.memory_space<vmem>>, vector<64x256xbf16>
    %cst_104 = arith.constant dense<0.000000e+00> : vector<2x256xf32>
    %281 = tpu.matmul %279, %280, %cst_104 {dimension_numbers = #tpu.dot_dimension_numbers<[1], [0], [0], [1], [0, 0, 1, 1], [], []>} : vector<2x64xbf16>, vector<64x256xbf16>, vector<2x256xf32> -> vector<2x256xf32>
    %282 = arith.addf %281, %243 : vector<2x256xf32>
    %283 = arith.addf %282, %10 : vector<2x256xf32>
    %284 = vector.extract_strided_slice %283 {offsets = [0, 0], sizes = [2, 64], strides = [1, 1]} : vector<2x256xf32> to vector<2x64xf32>
    %cst_105 = arith.constant 5.000000e-01 : f32
    %285 = vector.broadcast %cst_105 : f32 to vector<2x64xf32>
    %286 = arith.mulf %285, %284 : vector<2x64xf32>
    %287 = math.tanh %286 : vector<2x64xf32>
    %cst_106 = arith.constant 5.000000e-01 : f32
    %288 = vector.broadcast %cst_106 : f32 to vector<2x64xf32>
    %289 = arith.mulf %288, %287 : vector<2x64xf32>
    %cst_107 = arith.constant 5.000000e-01 : f32
    %290 = vector.broadcast %cst_107 : f32 to vector<2x64xf32>
    %291 = arith.addf %289, %290 : vector<2x64xf32>
    %292 = vector.extract_strided_slice %283 {offsets = [0, 64], sizes = [2, 64], strides = [1, 1]} : vector<2x256xf32> to vector<2x64xf32>
    %cst_108 = arith.constant 5.000000e-01 : f32
    %293 = vector.broadcast %cst_108 : f32 to vector<2x64xf32>
    %294 = arith.mulf %293, %292 : vector<2x64xf32>
    %295 = math.tanh %294 : vector<2x64xf32>
    %cst_109 = arith.constant 5.000000e-01 : f32
    %296 = vector.broadcast %cst_109 : f32 to vector<2x64xf32>
    %297 = arith.mulf %296, %295 : vector<2x64xf32>
    %cst_110 = arith.constant 5.000000e-01 : f32
    %298 = vector.broadcast %cst_110 : f32 to vector<2x64xf32>
    %299 = arith.addf %297, %298 : vector<2x64xf32>
    %300 = vector.extract_strided_slice %283 {offsets = [0, 128], sizes = [2, 64], strides = [1, 1]} : vector<2x256xf32> to vector<2x64xf32>
    %301 = math.tanh %300 : vector<2x64xf32>
    %302 = vector.extract_strided_slice %283 {offsets = [0, 192], sizes = [2, 64], strides = [1, 1]} : vector<2x256xf32> to vector<2x64xf32>
    %cst_111 = arith.constant 5.000000e-01 : f32
    %303 = vector.broadcast %cst_111 : f32 to vector<2x64xf32>
    %304 = arith.mulf %303, %302 : vector<2x64xf32>
    %305 = math.tanh %304 : vector<2x64xf32>
    %cst_112 = arith.constant 5.000000e-01 : f32
    %306 = vector.broadcast %cst_112 : f32 to vector<2x64xf32>
    %307 = arith.mulf %306, %305 : vector<2x64xf32>
    %cst_113 = arith.constant 5.000000e-01 : f32
    %308 = vector.broadcast %cst_113 : f32 to vector<2x64xf32>
    %309 = arith.addf %307, %308 : vector<2x64xf32>
    %310 = arith.mulf %299, %237 : vector<2x64xf32>
    %311 = arith.mulf %291, %301 : vector<2x64xf32>
    %312 = arith.addf %310, %311 : vector<2x64xf32>
    %313 = math.tanh %312 : vector<2x64xf32>
    %314 = arith.mulf %309, %313 : vector<2x64xf32>
    %315 = vector.extract_strided_slice %7 {offsets = [8, 0], sizes = [2, 256], strides = [1, 1]} : vector<16x256xf32> to vector<2x256xf32>
    %316 = arith.truncf %314 : vector<2x64xf32> to vector<2x64xbf16>
    %c128_114 = arith.constant 128 : index
    %c0_115 = arith.constant 0 : index
    %317 = vector.load %arg2[%c128_114, %c0_115] : memref<192x256xbf16, #tpu.memory_space<vmem>>, vector<64x256xbf16>
    %cst_116 = arith.constant dense<0.000000e+00> : vector<2x256xf32>
    %318 = tpu.matmul %316, %317, %cst_116 {dimension_numbers = #tpu.dot_dimension_numbers<[1], [0], [0], [1], [0, 0, 1, 1], [], []>} : vector<2x64xbf16>, vector<64x256xbf16>, vector<2x256xf32> -> vector<2x256xf32>
    %319 = arith.truncf %278 : vector<2x64xf32> to vector<2x64xbf16>
    %c0_117 = arith.constant 0 : index
    %c0_118 = arith.constant 0 : index
    %320 = vector.load %arg2[%c0_117, %c0_118] : memref<192x256xbf16, #tpu.memory_space<vmem>>, vector<64x256xbf16>
    %cst_119 = arith.constant dense<0.000000e+00> : vector<2x256xf32>
    %321 = tpu.matmul %319, %320, %cst_119 {dimension_numbers = #tpu.dot_dimension_numbers<[1], [0], [0], [1], [0, 0, 1, 1], [], []>} : vector<2x64xbf16>, vector<64x256xbf16>, vector<2x256xf32> -> vector<2x256xf32>
    %322 = arith.addf %321, %315 : vector<2x256xf32>
    %323 = vector.extract_strided_slice %322 {offsets = [0, 0], sizes = [2, 64], strides = [1, 1]} : vector<2x256xf32> to vector<2x64xf32>
    %cst_120 = arith.constant 5.000000e-01 : f32
    %324 = vector.broadcast %cst_120 : f32 to vector<2x64xf32>
    %325 = arith.mulf %324, %323 : vector<2x64xf32>
    %326 = math.tanh %325 : vector<2x64xf32>
    %cst_121 = arith.constant 5.000000e-01 : f32
    %327 = vector.broadcast %cst_121 : f32 to vector<2x64xf32>
    %328 = arith.mulf %327, %326 : vector<2x64xf32>
    %cst_122 = arith.constant 5.000000e-01 : f32
    %329 = vector.broadcast %cst_122 : f32 to vector<2x64xf32>
    %330 = arith.addf %328, %329 : vector<2x64xf32>
    %331 = vector.extract_strided_slice %322 {offsets = [0, 64], sizes = [2, 64], strides = [1, 1]} : vector<2x256xf32> to vector<2x64xf32>
    %cst_123 = arith.constant 5.000000e-01 : f32
    %332 = vector.broadcast %cst_123 : f32 to vector<2x64xf32>
    %333 = arith.mulf %332, %331 : vector<2x64xf32>
    %334 = math.tanh %333 : vector<2x64xf32>
    %cst_124 = arith.constant 5.000000e-01 : f32
    %335 = vector.broadcast %cst_124 : f32 to vector<2x64xf32>
    %336 = arith.mulf %335, %334 : vector<2x64xf32>
    %cst_125 = arith.constant 5.000000e-01 : f32
    %337 = vector.broadcast %cst_125 : f32 to vector<2x64xf32>
    %338 = arith.addf %336, %337 : vector<2x64xf32>
    %339 = vector.extract_strided_slice %322 {offsets = [0, 128], sizes = [2, 64], strides = [1, 1]} : vector<2x256xf32> to vector<2x64xf32>
    %340 = math.tanh %339 : vector<2x64xf32>
    %341 = vector.extract_strided_slice %322 {offsets = [0, 192], sizes = [2, 64], strides = [1, 1]} : vector<2x256xf32> to vector<2x64xf32>
    %cst_126 = arith.constant 5.000000e-01 : f32
    %342 = vector.broadcast %cst_126 : f32 to vector<2x64xf32>
    %343 = arith.mulf %342, %341 : vector<2x64xf32>
    %344 = math.tanh %343 : vector<2x64xf32>
    %cst_127 = arith.constant 5.000000e-01 : f32
    %345 = vector.broadcast %cst_127 : f32 to vector<2x64xf32>
    %346 = arith.mulf %345, %344 : vector<2x64xf32>
    %cst_128 = arith.constant 5.000000e-01 : f32
    %347 = vector.broadcast %cst_128 : f32 to vector<2x64xf32>
    %348 = arith.addf %346, %347 : vector<2x64xf32>
    %349 = arith.mulf %338, %276 : vector<2x64xf32>
    %350 = arith.mulf %330, %340 : vector<2x64xf32>
    %351 = arith.addf %349, %350 : vector<2x64xf32>
    %352 = math.tanh %351 : vector<2x64xf32>
    %353 = arith.mulf %348, %352 : vector<2x64xf32>
    %354 = arith.truncf %353 : vector<2x64xf32> to vector<2x64xbf16>
    %c64_129 = arith.constant 64 : index
    %c0_130 = arith.constant 0 : index
    %355 = vector.load %arg2[%c64_129, %c0_130] : memref<192x256xbf16, #tpu.memory_space<vmem>>, vector<64x256xbf16>
    %cst_131 = arith.constant dense<0.000000e+00> : vector<2x256xf32>
    %356 = tpu.matmul %354, %355, %cst_131 {dimension_numbers = #tpu.dot_dimension_numbers<[1], [0], [0], [1], [0, 0, 1, 1], [], []>} : vector<2x64xbf16>, vector<64x256xbf16>, vector<2x256xf32> -> vector<2x256xf32>
    %357 = arith.addf %356, %318 : vector<2x256xf32>
    %358 = arith.addf %357, %10 : vector<2x256xf32>
    %359 = vector.extract_strided_slice %358 {offsets = [0, 0], sizes = [2, 64], strides = [1, 1]} : vector<2x256xf32> to vector<2x64xf32>
    %cst_132 = arith.constant 5.000000e-01 : f32
    %360 = vector.broadcast %cst_132 : f32 to vector<2x64xf32>
    %361 = arith.mulf %360, %359 : vector<2x64xf32>
    %362 = math.tanh %361 : vector<2x64xf32>
    %cst_133 = arith.constant 5.000000e-01 : f32
    %363 = vector.broadcast %cst_133 : f32 to vector<2x64xf32>
    %364 = arith.mulf %363, %362 : vector<2x64xf32>
    %cst_134 = arith.constant 5.000000e-01 : f32
    %365 = vector.broadcast %cst_134 : f32 to vector<2x64xf32>
    %366 = arith.addf %364, %365 : vector<2x64xf32>
    %367 = vector.extract_strided_slice %358 {offsets = [0, 64], sizes = [2, 64], strides = [1, 1]} : vector<2x256xf32> to vector<2x64xf32>
    %cst_135 = arith.constant 5.000000e-01 : f32
    %368 = vector.broadcast %cst_135 : f32 to vector<2x64xf32>
    %369 = arith.mulf %368, %367 : vector<2x64xf32>
    %370 = math.tanh %369 : vector<2x64xf32>
    %cst_136 = arith.constant 5.000000e-01 : f32
    %371 = vector.broadcast %cst_136 : f32 to vector<2x64xf32>
    %372 = arith.mulf %371, %370 : vector<2x64xf32>
    %cst_137 = arith.constant 5.000000e-01 : f32
    %373 = vector.broadcast %cst_137 : f32 to vector<2x64xf32>
    %374 = arith.addf %372, %373 : vector<2x64xf32>
    %375 = vector.extract_strided_slice %358 {offsets = [0, 128], sizes = [2, 64], strides = [1, 1]} : vector<2x256xf32> to vector<2x64xf32>
    %376 = math.tanh %375 : vector<2x64xf32>
    %377 = vector.extract_strided_slice %358 {offsets = [0, 192], sizes = [2, 64], strides = [1, 1]} : vector<2x256xf32> to vector<2x64xf32>
    %cst_138 = arith.constant 5.000000e-01 : f32
    %378 = vector.broadcast %cst_138 : f32 to vector<2x64xf32>
    %379 = arith.mulf %378, %377 : vector<2x64xf32>
    %380 = math.tanh %379 : vector<2x64xf32>
    %cst_139 = arith.constant 5.000000e-01 : f32
    %381 = vector.broadcast %cst_139 : f32 to vector<2x64xf32>
    %382 = arith.mulf %381, %380 : vector<2x64xf32>
    %cst_140 = arith.constant 5.000000e-01 : f32
    %383 = vector.broadcast %cst_140 : f32 to vector<2x64xf32>
    %384 = arith.addf %382, %383 : vector<2x64xf32>
    %385 = arith.mulf %374, %312 : vector<2x64xf32>
    %386 = arith.mulf %366, %376 : vector<2x64xf32>
    %387 = arith.addf %385, %386 : vector<2x64xf32>
    %388 = math.tanh %387 : vector<2x64xf32>
    %389 = arith.mulf %384, %388 : vector<2x64xf32>
    %390 = vector.extract_strided_slice %7 {offsets = [10, 0], sizes = [2, 256], strides = [1, 1]} : vector<16x256xf32> to vector<2x256xf32>
    %391 = arith.truncf %389 : vector<2x64xf32> to vector<2x64xbf16>
    %c128_141 = arith.constant 128 : index
    %c0_142 = arith.constant 0 : index
    %392 = vector.load %arg2[%c128_141, %c0_142] : memref<192x256xbf16, #tpu.memory_space<vmem>>, vector<64x256xbf16>
    %cst_143 = arith.constant dense<0.000000e+00> : vector<2x256xf32>
    %393 = tpu.matmul %391, %392, %cst_143 {dimension_numbers = #tpu.dot_dimension_numbers<[1], [0], [0], [1], [0, 0, 1, 1], [], []>} : vector<2x64xbf16>, vector<64x256xbf16>, vector<2x256xf32> -> vector<2x256xf32>
    %394 = arith.truncf %353 : vector<2x64xf32> to vector<2x64xbf16>
    %c0_144 = arith.constant 0 : index
    %c0_145 = arith.constant 0 : index
    %395 = vector.load %arg2[%c0_144, %c0_145] : memref<192x256xbf16, #tpu.memory_space<vmem>>, vector<64x256xbf16>
    %cst_146 = arith.constant dense<0.000000e+00> : vector<2x256xf32>
    %396 = tpu.matmul %394, %395, %cst_146 {dimension_numbers = #tpu.dot_dimension_numbers<[1], [0], [0], [1], [0, 0, 1, 1], [], []>} : vector<2x64xbf16>, vector<64x256xbf16>, vector<2x256xf32> -> vector<2x256xf32>
    %397 = arith.addf %396, %390 : vector<2x256xf32>
    %398 = vector.extract_strided_slice %397 {offsets = [0, 0], sizes = [2, 64], strides = [1, 1]} : vector<2x256xf32> to vector<2x64xf32>
    %cst_147 = arith.constant 5.000000e-01 : f32
    %399 = vector.broadcast %cst_147 : f32 to vector<2x64xf32>
    %400 = arith.mulf %399, %398 : vector<2x64xf32>
    %401 = math.tanh %400 : vector<2x64xf32>
    %cst_148 = arith.constant 5.000000e-01 : f32
    %402 = vector.broadcast %cst_148 : f32 to vector<2x64xf32>
    %403 = arith.mulf %402, %401 : vector<2x64xf32>
    %cst_149 = arith.constant 5.000000e-01 : f32
    %404 = vector.broadcast %cst_149 : f32 to vector<2x64xf32>
    %405 = arith.addf %403, %404 : vector<2x64xf32>
    %406 = vector.extract_strided_slice %397 {offsets = [0, 64], sizes = [2, 64], strides = [1, 1]} : vector<2x256xf32> to vector<2x64xf32>
    %cst_150 = arith.constant 5.000000e-01 : f32
    %407 = vector.broadcast %cst_150 : f32 to vector<2x64xf32>
    %408 = arith.mulf %407, %406 : vector<2x64xf32>
    %409 = math.tanh %408 : vector<2x64xf32>
    %cst_151 = arith.constant 5.000000e-01 : f32
    %410 = vector.broadcast %cst_151 : f32 to vector<2x64xf32>
    %411 = arith.mulf %410, %409 : vector<2x64xf32>
    %cst_152 = arith.constant 5.000000e-01 : f32
    %412 = vector.broadcast %cst_152 : f32 to vector<2x64xf32>
    %413 = arith.addf %411, %412 : vector<2x64xf32>
    %414 = vector.extract_strided_slice %397 {offsets = [0, 128], sizes = [2, 64], strides = [1, 1]} : vector<2x256xf32> to vector<2x64xf32>
    %415 = math.tanh %414 : vector<2x64xf32>
    %416 = vector.extract_strided_slice %397 {offsets = [0, 192], sizes = [2, 64], strides = [1, 1]} : vector<2x256xf32> to vector<2x64xf32>
    %cst_153 = arith.constant 5.000000e-01 : f32
    %417 = vector.broadcast %cst_153 : f32 to vector<2x64xf32>
    %418 = arith.mulf %417, %416 : vector<2x64xf32>
    %419 = math.tanh %418 : vector<2x64xf32>
    %cst_154 = arith.constant 5.000000e-01 : f32
    %420 = vector.broadcast %cst_154 : f32 to vector<2x64xf32>
    %421 = arith.mulf %420, %419 : vector<2x64xf32>
    %cst_155 = arith.constant 5.000000e-01 : f32
    %422 = vector.broadcast %cst_155 : f32 to vector<2x64xf32>
    %423 = arith.addf %421, %422 : vector<2x64xf32>
    %424 = arith.mulf %413, %351 : vector<2x64xf32>
    %425 = arith.mulf %405, %415 : vector<2x64xf32>
    %426 = arith.addf %424, %425 : vector<2x64xf32>
    %427 = math.tanh %426 : vector<2x64xf32>
    %428 = arith.mulf %423, %427 : vector<2x64xf32>
    %429 = arith.truncf %428 : vector<2x64xf32> to vector<2x64xbf16>
    %c64_156 = arith.constant 64 : index
    %c0_157 = arith.constant 0 : index
    %430 = vector.load %arg2[%c64_156, %c0_157] : memref<192x256xbf16, #tpu.memory_space<vmem>>, vector<64x256xbf16>
    %cst_158 = arith.constant dense<0.000000e+00> : vector<2x256xf32>
    %431 = tpu.matmul %429, %430, %cst_158 {dimension_numbers = #tpu.dot_dimension_numbers<[1], [0], [0], [1], [0, 0, 1, 1], [], []>} : vector<2x64xbf16>, vector<64x256xbf16>, vector<2x256xf32> -> vector<2x256xf32>
    %432 = arith.addf %431, %393 : vector<2x256xf32>
    %433 = arith.addf %432, %10 : vector<2x256xf32>
    %434 = vector.extract_strided_slice %433 {offsets = [0, 0], sizes = [2, 64], strides = [1, 1]} : vector<2x256xf32> to vector<2x64xf32>
    %cst_159 = arith.constant 5.000000e-01 : f32
    %435 = vector.broadcast %cst_159 : f32 to vector<2x64xf32>
    %436 = arith.mulf %435, %434 : vector<2x64xf32>
    %437 = math.tanh %436 : vector<2x64xf32>
    %cst_160 = arith.constant 5.000000e-01 : f32
    %438 = vector.broadcast %cst_160 : f32 to vector<2x64xf32>
    %439 = arith.mulf %438, %437 : vector<2x64xf32>
    %cst_161 = arith.constant 5.000000e-01 : f32
    %440 = vector.broadcast %cst_161 : f32 to vector<2x64xf32>
    %441 = arith.addf %439, %440 : vector<2x64xf32>
    %442 = vector.extract_strided_slice %433 {offsets = [0, 64], sizes = [2, 64], strides = [1, 1]} : vector<2x256xf32> to vector<2x64xf32>
    %cst_162 = arith.constant 5.000000e-01 : f32
    %443 = vector.broadcast %cst_162 : f32 to vector<2x64xf32>
    %444 = arith.mulf %443, %442 : vector<2x64xf32>
    %445 = math.tanh %444 : vector<2x64xf32>
    %cst_163 = arith.constant 5.000000e-01 : f32
    %446 = vector.broadcast %cst_163 : f32 to vector<2x64xf32>
    %447 = arith.mulf %446, %445 : vector<2x64xf32>
    %cst_164 = arith.constant 5.000000e-01 : f32
    %448 = vector.broadcast %cst_164 : f32 to vector<2x64xf32>
    %449 = arith.addf %447, %448 : vector<2x64xf32>
    %450 = vector.extract_strided_slice %433 {offsets = [0, 128], sizes = [2, 64], strides = [1, 1]} : vector<2x256xf32> to vector<2x64xf32>
    %451 = math.tanh %450 : vector<2x64xf32>
    %452 = vector.extract_strided_slice %433 {offsets = [0, 192], sizes = [2, 64], strides = [1, 1]} : vector<2x256xf32> to vector<2x64xf32>
    %cst_165 = arith.constant 5.000000e-01 : f32
    %453 = vector.broadcast %cst_165 : f32 to vector<2x64xf32>
    %454 = arith.mulf %453, %452 : vector<2x64xf32>
    %455 = math.tanh %454 : vector<2x64xf32>
    %cst_166 = arith.constant 5.000000e-01 : f32
    %456 = vector.broadcast %cst_166 : f32 to vector<2x64xf32>
    %457 = arith.mulf %456, %455 : vector<2x64xf32>
    %cst_167 = arith.constant 5.000000e-01 : f32
    %458 = vector.broadcast %cst_167 : f32 to vector<2x64xf32>
    %459 = arith.addf %457, %458 : vector<2x64xf32>
    %460 = arith.mulf %449, %387 : vector<2x64xf32>
    %461 = arith.mulf %441, %451 : vector<2x64xf32>
    %462 = arith.addf %460, %461 : vector<2x64xf32>
    %463 = math.tanh %462 : vector<2x64xf32>
    %464 = arith.mulf %459, %463 : vector<2x64xf32>
    %465 = vector.extract_strided_slice %7 {offsets = [12, 0], sizes = [2, 256], strides = [1, 1]} : vector<16x256xf32> to vector<2x256xf32>
    %466 = arith.truncf %464 : vector<2x64xf32> to vector<2x64xbf16>
    %c128_168 = arith.constant 128 : index
    %c0_169 = arith.constant 0 : index
    %467 = vector.load %arg2[%c128_168, %c0_169] : memref<192x256xbf16, #tpu.memory_space<vmem>>, vector<64x256xbf16>
    %cst_170 = arith.constant dense<0.000000e+00> : vector<2x256xf32>
    %468 = tpu.matmul %466, %467, %cst_170 {dimension_numbers = #tpu.dot_dimension_numbers<[1], [0], [0], [1], [0, 0, 1, 1], [], []>} : vector<2x64xbf16>, vector<64x256xbf16>, vector<2x256xf32> -> vector<2x256xf32>
    %469 = arith.truncf %428 : vector<2x64xf32> to vector<2x64xbf16>
    %c0_171 = arith.constant 0 : index
    %c0_172 = arith.constant 0 : index
    %470 = vector.load %arg2[%c0_171, %c0_172] : memref<192x256xbf16, #tpu.memory_space<vmem>>, vector<64x256xbf16>
    %cst_173 = arith.constant dense<0.000000e+00> : vector<2x256xf32>
    %471 = tpu.matmul %469, %470, %cst_173 {dimension_numbers = #tpu.dot_dimension_numbers<[1], [0], [0], [1], [0, 0, 1, 1], [], []>} : vector<2x64xbf16>, vector<64x256xbf16>, vector<2x256xf32> -> vector<2x256xf32>
    %472 = arith.addf %471, %465 : vector<2x256xf32>
    %473 = vector.extract_strided_slice %472 {offsets = [0, 0], sizes = [2, 64], strides = [1, 1]} : vector<2x256xf32> to vector<2x64xf32>
    %cst_174 = arith.constant 5.000000e-01 : f32
    %474 = vector.broadcast %cst_174 : f32 to vector<2x64xf32>
    %475 = arith.mulf %474, %473 : vector<2x64xf32>
    %476 = math.tanh %475 : vector<2x64xf32>
    %cst_175 = arith.constant 5.000000e-01 : f32
    %477 = vector.broadcast %cst_175 : f32 to vector<2x64xf32>
    %478 = arith.mulf %477, %476 : vector<2x64xf32>
    %cst_176 = arith.constant 5.000000e-01 : f32
    %479 = vector.broadcast %cst_176 : f32 to vector<2x64xf32>
    %480 = arith.addf %478, %479 : vector<2x64xf32>
    %481 = vector.extract_strided_slice %472 {offsets = [0, 64], sizes = [2, 64], strides = [1, 1]} : vector<2x256xf32> to vector<2x64xf32>
    %cst_177 = arith.constant 5.000000e-01 : f32
    %482 = vector.broadcast %cst_177 : f32 to vector<2x64xf32>
    %483 = arith.mulf %482, %481 : vector<2x64xf32>
    %484 = math.tanh %483 : vector<2x64xf32>
    %cst_178 = arith.constant 5.000000e-01 : f32
    %485 = vector.broadcast %cst_178 : f32 to vector<2x64xf32>
    %486 = arith.mulf %485, %484 : vector<2x64xf32>
    %cst_179 = arith.constant 5.000000e-01 : f32
    %487 = vector.broadcast %cst_179 : f32 to vector<2x64xf32>
    %488 = arith.addf %486, %487 : vector<2x64xf32>
    %489 = vector.extract_strided_slice %472 {offsets = [0, 128], sizes = [2, 64], strides = [1, 1]} : vector<2x256xf32> to vector<2x64xf32>
    %490 = math.tanh %489 : vector<2x64xf32>
    %491 = vector.extract_strided_slice %472 {offsets = [0, 192], sizes = [2, 64], strides = [1, 1]} : vector<2x256xf32> to vector<2x64xf32>
    %cst_180 = arith.constant 5.000000e-01 : f32
    %492 = vector.broadcast %cst_180 : f32 to vector<2x64xf32>
    %493 = arith.mulf %492, %491 : vector<2x64xf32>
    %494 = math.tanh %493 : vector<2x64xf32>
    %cst_181 = arith.constant 5.000000e-01 : f32
    %495 = vector.broadcast %cst_181 : f32 to vector<2x64xf32>
    %496 = arith.mulf %495, %494 : vector<2x64xf32>
    %cst_182 = arith.constant 5.000000e-01 : f32
    %497 = vector.broadcast %cst_182 : f32 to vector<2x64xf32>
    %498 = arith.addf %496, %497 : vector<2x64xf32>
    %499 = arith.mulf %488, %426 : vector<2x64xf32>
    %500 = arith.mulf %480, %490 : vector<2x64xf32>
    %501 = arith.addf %499, %500 : vector<2x64xf32>
    %502 = math.tanh %501 : vector<2x64xf32>
    %503 = arith.mulf %498, %502 : vector<2x64xf32>
    %504 = arith.truncf %503 : vector<2x64xf32> to vector<2x64xbf16>
    %c64_183 = arith.constant 64 : index
    %c0_184 = arith.constant 0 : index
    %505 = vector.load %arg2[%c64_183, %c0_184] : memref<192x256xbf16, #tpu.memory_space<vmem>>, vector<64x256xbf16>
    %cst_185 = arith.constant dense<0.000000e+00> : vector<2x256xf32>
    %506 = tpu.matmul %504, %505, %cst_185 {dimension_numbers = #tpu.dot_dimension_numbers<[1], [0], [0], [1], [0, 0, 1, 1], [], []>} : vector<2x64xbf16>, vector<64x256xbf16>, vector<2x256xf32> -> vector<2x256xf32>
    %507 = arith.addf %506, %468 : vector<2x256xf32>
    %508 = arith.addf %507, %10 : vector<2x256xf32>
    %509 = vector.extract_strided_slice %508 {offsets = [0, 0], sizes = [2, 64], strides = [1, 1]} : vector<2x256xf32> to vector<2x64xf32>
    %cst_186 = arith.constant 5.000000e-01 : f32
    %510 = vector.broadcast %cst_186 : f32 to vector<2x64xf32>
    %511 = arith.mulf %510, %509 : vector<2x64xf32>
    %512 = math.tanh %511 : vector<2x64xf32>
    %cst_187 = arith.constant 5.000000e-01 : f32
    %513 = vector.broadcast %cst_187 : f32 to vector<2x64xf32>
    %514 = arith.mulf %513, %512 : vector<2x64xf32>
    %cst_188 = arith.constant 5.000000e-01 : f32
    %515 = vector.broadcast %cst_188 : f32 to vector<2x64xf32>
    %516 = arith.addf %514, %515 : vector<2x64xf32>
    %517 = vector.extract_strided_slice %508 {offsets = [0, 64], sizes = [2, 64], strides = [1, 1]} : vector<2x256xf32> to vector<2x64xf32>
    %cst_189 = arith.constant 5.000000e-01 : f32
    %518 = vector.broadcast %cst_189 : f32 to vector<2x64xf32>
    %519 = arith.mulf %518, %517 : vector<2x64xf32>
    %520 = math.tanh %519 : vector<2x64xf32>
    %cst_190 = arith.constant 5.000000e-01 : f32
    %521 = vector.broadcast %cst_190 : f32 to vector<2x64xf32>
    %522 = arith.mulf %521, %520 : vector<2x64xf32>
    %cst_191 = arith.constant 5.000000e-01 : f32
    %523 = vector.broadcast %cst_191 : f32 to vector<2x64xf32>
    %524 = arith.addf %522, %523 : vector<2x64xf32>
    %525 = vector.extract_strided_slice %508 {offsets = [0, 128], sizes = [2, 64], strides = [1, 1]} : vector<2x256xf32> to vector<2x64xf32>
    %526 = math.tanh %525 : vector<2x64xf32>
    %527 = vector.extract_strided_slice %508 {offsets = [0, 192], sizes = [2, 64], strides = [1, 1]} : vector<2x256xf32> to vector<2x64xf32>
    %cst_192 = arith.constant 5.000000e-01 : f32
    %528 = vector.broadcast %cst_192 : f32 to vector<2x64xf32>
    %529 = arith.mulf %528, %527 : vector<2x64xf32>
    %530 = math.tanh %529 : vector<2x64xf32>
    %cst_193 = arith.constant 5.000000e-01 : f32
    %531 = vector.broadcast %cst_193 : f32 to vector<2x64xf32>
    %532 = arith.mulf %531, %530 : vector<2x64xf32>
    %cst_194 = arith.constant 5.000000e-01 : f32
    %533 = vector.broadcast %cst_194 : f32 to vector<2x64xf32>
    %534 = arith.addf %532, %533 : vector<2x64xf32>
    %535 = arith.mulf %524, %462 : vector<2x64xf32>
    %536 = arith.mulf %516, %526 : vector<2x64xf32>
    %537 = arith.addf %535, %536 : vector<2x64xf32>
    %538 = math.tanh %537 : vector<2x64xf32>
    %539 = arith.mulf %534, %538 : vector<2x64xf32>
    %540 = vector.extract_strided_slice %7 {offsets = [14, 0], sizes = [2, 256], strides = [1, 1]} : vector<16x256xf32> to vector<2x256xf32>
    %541 = arith.truncf %539 : vector<2x64xf32> to vector<2x64xbf16>
    %c128_195 = arith.constant 128 : index
    %c0_196 = arith.constant 0 : index
    %542 = vector.load %arg2[%c128_195, %c0_196] : memref<192x256xbf16, #tpu.memory_space<vmem>>, vector<64x256xbf16>
    %cst_197 = arith.constant dense<0.000000e+00> : vector<2x256xf32>
    %543 = tpu.matmul %541, %542, %cst_197 {dimension_numbers = #tpu.dot_dimension_numbers<[1], [0], [0], [1], [0, 0, 1, 1], [], []>} : vector<2x64xbf16>, vector<64x256xbf16>, vector<2x256xf32> -> vector<2x256xf32>
    %544 = arith.truncf %503 : vector<2x64xf32> to vector<2x64xbf16>
    %c0_198 = arith.constant 0 : index
    %c0_199 = arith.constant 0 : index
    %545 = vector.load %arg2[%c0_198, %c0_199] : memref<192x256xbf16, #tpu.memory_space<vmem>>, vector<64x256xbf16>
    %cst_200 = arith.constant dense<0.000000e+00> : vector<2x256xf32>
    %546 = tpu.matmul %544, %545, %cst_200 {dimension_numbers = #tpu.dot_dimension_numbers<[1], [0], [0], [1], [0, 0, 1, 1], [], []>} : vector<2x64xbf16>, vector<64x256xbf16>, vector<2x256xf32> -> vector<2x256xf32>
    %547 = arith.addf %546, %540 : vector<2x256xf32>
    %548 = vector.extract_strided_slice %547 {offsets = [0, 0], sizes = [2, 64], strides = [1, 1]} : vector<2x256xf32> to vector<2x64xf32>
    %cst_201 = arith.constant 5.000000e-01 : f32
    %549 = vector.broadcast %cst_201 : f32 to vector<2x64xf32>
    %550 = arith.mulf %549, %548 : vector<2x64xf32>
    %551 = math.tanh %550 : vector<2x64xf32>
    %cst_202 = arith.constant 5.000000e-01 : f32
    %552 = vector.broadcast %cst_202 : f32 to vector<2x64xf32>
    %553 = arith.mulf %552, %551 : vector<2x64xf32>
    %cst_203 = arith.constant 5.000000e-01 : f32
    %554 = vector.broadcast %cst_203 : f32 to vector<2x64xf32>
    %555 = arith.addf %553, %554 : vector<2x64xf32>
    %556 = vector.extract_strided_slice %547 {offsets = [0, 64], sizes = [2, 64], strides = [1, 1]} : vector<2x256xf32> to vector<2x64xf32>
    %cst_204 = arith.constant 5.000000e-01 : f32
    %557 = vector.broadcast %cst_204 : f32 to vector<2x64xf32>
    %558 = arith.mulf %557, %556 : vector<2x64xf32>
    %559 = math.tanh %558 : vector<2x64xf32>
    %cst_205 = arith.constant 5.000000e-01 : f32
    %560 = vector.broadcast %cst_205 : f32 to vector<2x64xf32>
    %561 = arith.mulf %560, %559 : vector<2x64xf32>
    %cst_206 = arith.constant 5.000000e-01 : f32
    %562 = vector.broadcast %cst_206 : f32 to vector<2x64xf32>
    %563 = arith.addf %561, %562 : vector<2x64xf32>
    %564 = vector.extract_strided_slice %547 {offsets = [0, 128], sizes = [2, 64], strides = [1, 1]} : vector<2x256xf32> to vector<2x64xf32>
    %565 = math.tanh %564 : vector<2x64xf32>
    %566 = vector.extract_strided_slice %547 {offsets = [0, 192], sizes = [2, 64], strides = [1, 1]} : vector<2x256xf32> to vector<2x64xf32>
    %cst_207 = arith.constant 5.000000e-01 : f32
    %567 = vector.broadcast %cst_207 : f32 to vector<2x64xf32>
    %568 = arith.mulf %567, %566 : vector<2x64xf32>
    %569 = math.tanh %568 : vector<2x64xf32>
    %cst_208 = arith.constant 5.000000e-01 : f32
    %570 = vector.broadcast %cst_208 : f32 to vector<2x64xf32>
    %571 = arith.mulf %570, %569 : vector<2x64xf32>
    %cst_209 = arith.constant 5.000000e-01 : f32
    %572 = vector.broadcast %cst_209 : f32 to vector<2x64xf32>
    %573 = arith.addf %571, %572 : vector<2x64xf32>
    %574 = arith.mulf %563, %501 : vector<2x64xf32>
    %575 = arith.mulf %555, %565 : vector<2x64xf32>
    %576 = arith.addf %574, %575 : vector<2x64xf32>
    %577 = math.tanh %576 : vector<2x64xf32>
    %578 = arith.mulf %573, %577 : vector<2x64xf32>
    %579 = arith.truncf %578 : vector<2x64xf32> to vector<2x64xbf16>
    %c64_210 = arith.constant 64 : index
    %c0_211 = arith.constant 0 : index
    %580 = vector.load %arg2[%c64_210, %c0_211] : memref<192x256xbf16, #tpu.memory_space<vmem>>, vector<64x256xbf16>
    %cst_212 = arith.constant dense<0.000000e+00> : vector<2x256xf32>
    %581 = tpu.matmul %579, %580, %cst_212 {dimension_numbers = #tpu.dot_dimension_numbers<[1], [0], [0], [1], [0, 0, 1, 1], [], []>} : vector<2x64xbf16>, vector<64x256xbf16>, vector<2x256xf32> -> vector<2x256xf32>
    %582 = arith.addf %581, %543 : vector<2x256xf32>
    %583 = arith.addf %582, %10 : vector<2x256xf32>
    %584 = vector.extract_strided_slice %583 {offsets = [0, 0], sizes = [2, 64], strides = [1, 1]} : vector<2x256xf32> to vector<2x64xf32>
    %cst_213 = arith.constant 5.000000e-01 : f32
    %585 = vector.broadcast %cst_213 : f32 to vector<2x64xf32>
    %586 = arith.mulf %585, %584 : vector<2x64xf32>
    %587 = math.tanh %586 : vector<2x64xf32>
    %cst_214 = arith.constant 5.000000e-01 : f32
    %588 = vector.broadcast %cst_214 : f32 to vector<2x64xf32>
    %589 = arith.mulf %588, %587 : vector<2x64xf32>
    %cst_215 = arith.constant 5.000000e-01 : f32
    %590 = vector.broadcast %cst_215 : f32 to vector<2x64xf32>
    %591 = arith.addf %589, %590 : vector<2x64xf32>
    %592 = vector.extract_strided_slice %583 {offsets = [0, 64], sizes = [2, 64], strides = [1, 1]} : vector<2x256xf32> to vector<2x64xf32>
    %cst_216 = arith.constant 5.000000e-01 : f32
    %593 = vector.broadcast %cst_216 : f32 to vector<2x64xf32>
    %594 = arith.mulf %593, %592 : vector<2x64xf32>
    %595 = math.tanh %594 : vector<2x64xf32>
    %cst_217 = arith.constant 5.000000e-01 : f32
    %596 = vector.broadcast %cst_217 : f32 to vector<2x64xf32>
    %597 = arith.mulf %596, %595 : vector<2x64xf32>
    %cst_218 = arith.constant 5.000000e-01 : f32
    %598 = vector.broadcast %cst_218 : f32 to vector<2x64xf32>
    %599 = arith.addf %597, %598 : vector<2x64xf32>
    %600 = vector.extract_strided_slice %583 {offsets = [0, 128], sizes = [2, 64], strides = [1, 1]} : vector<2x256xf32> to vector<2x64xf32>
    %601 = math.tanh %600 : vector<2x64xf32>
    %602 = vector.extract_strided_slice %583 {offsets = [0, 192], sizes = [2, 64], strides = [1, 1]} : vector<2x256xf32> to vector<2x64xf32>
    %cst_219 = arith.constant 5.000000e-01 : f32
    %603 = vector.broadcast %cst_219 : f32 to vector<2x64xf32>
    %604 = arith.mulf %603, %602 : vector<2x64xf32>
    %605 = math.tanh %604 : vector<2x64xf32>
    %cst_220 = arith.constant 5.000000e-01 : f32
    %606 = vector.broadcast %cst_220 : f32 to vector<2x64xf32>
    %607 = arith.mulf %606, %605 : vector<2x64xf32>
    %cst_221 = arith.constant 5.000000e-01 : f32
    %608 = vector.broadcast %cst_221 : f32 to vector<2x64xf32>
    %609 = arith.addf %607, %608 : vector<2x64xf32>
    %610 = arith.mulf %599, %537 : vector<2x64xf32>
    %611 = arith.mulf %591, %601 : vector<2x64xf32>
    %612 = arith.addf %610, %611 : vector<2x64xf32>
    %613 = math.tanh %612 : vector<2x64xf32>
    %614 = arith.mulf %609, %613 : vector<2x64xf32>
    %c3 = arith.constant 3 : index
    %c0_222 = arith.constant 0 : index
    %615 = vector.load %arg3[%c3, %c0_222] : memref<5x256xf32, #tpu.memory_space<vmem>>, vector<1x256xf32>
    %616 = vector.extract_strided_slice %615 {offsets = [0, 0], sizes = [1, 64], strides = [1, 1]} : vector<1x256xf32> to vector<1x64xf32>
    %c4 = arith.constant 4 : index
    %c0_223 = arith.constant 0 : index
    %617 = vector.load %arg3[%c4, %c0_223] : memref<5x256xf32, #tpu.memory_space<vmem>>, vector<1x256xf32>
    %618 = vector.extract_strided_slice %617 {offsets = [0, 0], sizes = [1, 1], strides = [1, 1]} : vector<1x256xf32> to vector<1x1xf32>
    %619 = vector.broadcast %616 : vector<1x64xf32> to vector<2x64xf32>
    %620 = arith.mulf %614, %619 : vector<2x64xf32>
    %cst_224 = arith.constant dense<0.000000e+00> : vector<2xf32>
    %621 = vector.multi_reduction <add>, %620, %cst_224 [1] : vector<2x64xf32> to vector<2xf32>
    %622 = vector.shape_cast %621 : vector<2xf32> to vector<2x1xf32>
    %623 = vector.broadcast %618 : vector<1x1xf32> to vector<2x1xf32>
    %624 = arith.addf %622, %623 : vector<2x1xf32>
    %c0_225 = arith.constant 0 : index
    %c0_226 = arith.constant 0 : index
    %625 = vector.load %arg4[%c0_225, %c0_226] : memref<2x1xf32, #tpu.memory_space<vmem>>, vector<2x1xf32>
    tpu.vector_store %arg4[%c0_225, %c0_226], %624 {strides = array<i32>} : memref<2x1xf32, #tpu.memory_space<vmem>>, vector<2x1xf32>,
    return
  }
  func.func @transform_0(%arg0: i32) -> (i32, i32) {
    %c0_i32 = arith.constant 0 : i32
    %c0_i32_0 = arith.constant 0 : i32
    %c0_i32_1 = arith.constant 0 : i32
    return %c0_i32, %c0_i32_0 : i32, i32
  }
  func.func @transform_1(%arg0: i32) -> (i32, i32) {
    %c0_i32 = arith.constant 0 : i32
    %c0_i32_0 = arith.constant 0 : i32
    %c0_i32_1 = arith.constant 0 : i32
    return %c0_i32, %c0_i32_0 : i32, i32
  }
  func.func @transform_2(%arg0: i32) -> (i32, i32) {
    %c0_i32 = arith.constant 0 : i32
    %c0_i32_0 = arith.constant 0 : i32
    %c0_i32_1 = arith.constant 0 : i32
    return %c0_i32, %c0_i32_0 : i32, i32
  }
  func.func @transform_3(%arg0: i32) -> (i32, i32) {
    %c0_i32 = arith.constant 0 : i32
    %c0_i32_0 = arith.constant 0 : i32
    %c0_i32_1 = arith.constant 0 : i32
    return %c0_i32, %c0_i32_0 : i32, i32
  }
}

</mosaic_0001>

<bundles_post_ra>
// kernel: tpu_custom_call.1
= control target key start
LH: loop header
LB: loop body
LE: loop exit
PB: predicated region body
PF: predicated region fallthrough
CT: control target
= control target key end

     0   :  { %8 = vsyncpa [#allocation3], 0  ;;  %s1637_s15 = smov [#allocation2]   ;;  %s1638_s17 = smov 128   ;;  %s2131_s0 = inlined_call_operand.vmem [shape: f32[16,1], index: 0, kind: input, shape index: {}]   ;;  %s2132_s1 = inlined_call_operand.hbm [shape: bf16[192,256], index: 1, kind: input, shape index: {}]   ;;  %s2133_s2 = inlined_call_operand.vmem [shape: f32[5,256], index: 2, kind: input, shape index: {}]   ;;  %s2134_s3 = inlined_call_operand.vmem [shape: f32[2,1], index: 3, kind: output, shape index: {}]  }
   0x1   :  { %s15_s14 = sshll.u32 %s2132_s1, 4  ;;  %s17_s16 = sshll.u32 %s1637_s15, 4  ;;  %s16_s14 = int_to_ptr.hbm [resolvable:$true] %s15_s14  ;;  %s18_s16 = int_to_ptr.vmem [resolvable:$true] %s17_s16 }
   0x2   :  { %s1639_s18 = smov 8  }
   0x3   :  { %23 = dma.hbm_to_vmem [thread:$0]  %s16_s14, 3072, %s18_s16, [#allocation3], %s1638_s17, %s1638_s17, %s1639_s18  }
   0x4   :  { %1635 = dma.done.wait [#allocation3], 3072  }
   0x5   :  { %1636 = vsyncadd [#allocation3], 4294964224  ;;  %v1640_v0 = vmov 0   ;;  %v1369_v1 = vld [vmem:[#allocation2 + $0x30] sm:$0xf]  ;;  %v34_v17 = vld [vmem:[%s2131_s0] sm:$0xff] }
   0x6   :  { %1482 = vset.pattern.permute.xlu0 %v1640_v0  ;;  %v1468_v2 = vld [vmem:[#allocation2 + $0x34] sm:$0xf0]  ;;  %v1467_v3 = vld [vmem:[#allocation2 + $0x34] sm:$0xf]  ;;  %v1371_v5 = vld [vmem:[#allocation2 + $0x38] sm:$0xf0] }
   0x7   :  { %v1666_v4 = vor.u32 %v1468_v2, %v1369_v1  ;;  %v1361_v6 = vld [vmem:[#allocation2 + $0x20] sm:$0xf]  ;;  %v1466_v7 = vld [vmem:[#allocation2 + $0x24] sm:$0xf0]  ;;  %v1668_v8 = vor.u32 %v1467_v3, %v1371_v5  ;;  %v1465_v9 = vld [vmem:[#allocation2 + $0x24] sm:$0xf]  ;;  %38 = vperm.xlu0 %1482, %v34_v17  }
   0x8   :  { %v1363_v10 = vld [vmem:[#allocation2 + $0x28] sm:$0xf0]  ;;  %v1671_v11 = vor.u32 %v1466_v7, %v1361_v6  ;;  %v1353_v13 = vld [vmem:[#allocation2 + $0x10] sm:$0xf]  ;;  %v1464_v14 = vld [vmem:[#allocation2 + $0x14] sm:$0xf0] }
   0x9   :  { %201 = vmatpush.bf16.msra.mxu2 %v1666_v4  ;;  %214 = vmatpush.bf16.msra.mxu3 %v1668_v8  ;;  %v1674_v12 = vor.u32 %v1465_v9, %v1363_v10  ;;  %v1463_v15 = vld [vmem:[#allocation2 + $0x14] sm:$0xf]  ;;  %v1355_v16 = vld [vmem:[#allocation2 + $0x18] sm:$0xf0]  ;;  %v1680_v18 = vor.u32 %v1464_v14, %v1353_v13  ;;  %v1345_v20 = vld [vmem:[#allocation2] sm:$0xf] }
   0xa   :  { %v1683_v19 = vor.u32 %v1463_v15, %v1355_v16  ;;  %v1462_v21 = vld [vmem:[#allocation2 + $0x4] sm:$0xf0]  ;;  %v1461_v22 = vld [vmem:[#allocation2 + $0x4] sm:$0xf]  ;;  %v1347_v23 = vld [vmem:[#allocation2 + $0x8] sm:$0xf0] }
   0xb   :  { %v1686_v24 = vor.u32 %v1462_v21, %v1345_v20  ;;  %v1689_v25 = vor.u32 %v1461_v22, %v1347_v23  ;;  %v1698_v26 = vld [vmem:[%s2133_s2] ss:$8 sm:$0x3]  ;;  %v1704_v29 = vld [vmem:[%s2133_s2 + $0x1] ss:$8 sm:$0x3] }
   0xc   :  { %v47_v27 = vperm.slane %v1698_v26, 0  ;;  %v48_v30 = vperm.slane %v1698_v26, 1  ;;  %v56_v32 = vperm.slane %v1704_v29, 0  ;;  %v57_v34 = vperm.slane %v1704_v29, 1  ;;  %s1641_s24 = smov 64  }
   0xd   :  { %202 = vmatpush.bf16.msra.mxu2 %v1671_v11  ;;  %215 = vmatpush.bf16.msra.mxu3 %v1674_v12  ;;  %v1337_v49 = vld [vmem:[#allocation2 + $0xb0] sm:$0xf]  ;;  %v1460_v50 = vld [vmem:[#allocation2 + $0xb4] sm:$0xf0]  ;;  %v1329_v51 = vld [vmem:[#allocation2 + $0xa0] sm:$0xf] }
   0xe   :  { %v1724_v52 = vor.u32 %v1460_v50, %v1337_v49  ;;  %v1458_v53 = vld [vmem:[#allocation2 + $0xa4] sm:$0xf0]  ;;  %v1459_v54 = vld [vmem:[#allocation2 + $0xb4] sm:$0xf]  ;;  %v1339_v55 = vld [vmem:[#allocation2 + $0xb8] sm:$0xf0] }
   0xf   :  { %v1726_v56 = vor.u32 %v1459_v54, %v1339_v55  ;;  %v1457_v57 = vld [vmem:[#allocation2 + $0xa4] sm:$0xf]  ;;  %v1729_v58 = vor.u32 %v1458_v53, %v1329_v51  ;;  %v1331_v59 = vld [vmem:[#allocation2 + $0xa8] sm:$0xf0]  ;;  %v1321_v60 = vld [vmem:[#allocation2 + $0x90] sm:$0xf] }
  0x10   :  { %127 = vmatpush.bf16.msra.mxu0 %v1724_v52  ;;  %v1456_v61 = vld [vmem:[#allocation2 + $0x94] sm:$0xf0]  ;;  %v1733_v62 = vor.u32 %v1457_v57, %v1331_v59  ;;  %v1455_v63 = vld [vmem:[#allocation2 + $0x94] sm:$0xf]  ;;  %v1323_v1 = vld [vmem:[#allocation2 + $0x98] sm:$0xf0] }
  0x11   :  { %203 = vmatpush.bf16.msra.mxu2 %v1680_v18  ;;  %216 = vmatpush.bf16.msra.mxu3 %v1683_v19  ;;  %v1737_v3 = vor.u32 %v1456_v61, %v1321_v60  ;;  %v1313_v5 = vld [vmem:[#allocation2 + $0x80] sm:$0xf]  ;;  %v1454_v6 = vld [vmem:[#allocation2 + $0x84] sm:$0xf0]  ;;  %v1741_v7 = vor.u32 %v1455_v63, %v1323_v1  ;;  %v1453_v9 = vld [vmem:[#allocation2 + $0x84] sm:$0xf] }
  0x12   :  { %140 = vmatpush.bf16.msra.mxu1 %v1726_v56  ;;  %v1315_v10 = vld [vmem:[#allocation2 + $0x88] sm:$0xf0]  ;;  %v1401_v13 = vld [vmem:[#allocation2 + $0x70] sm:$0xf]  ;;  %v1476_v14 = vld [vmem:[#allocation2 + $0x74] sm:$0xf0]  ;;  %v1745_v17 = vor.u32 %v1454_v6, %v1313_v5 }
  0x13   :  { %v1475_v15 = vld [vmem:[#allocation2 + $0x74] sm:$0xf]  ;;  %v1403_v16 = vld [vmem:[#allocation2 + $0x78] sm:$0xf0]  ;;  %v1749_v20 = vor.u32 %v1453_v9, %v1315_v10  ;;  %v1751_v21 = vor.u32 %v1476_v14, %v1401_v13  ;;  %v1393_v23 = vld [vmem:[#allocation2 + $0x60] sm:$0xf] }
  0x14   :  { %128 = vmatpush.bf16.msra.mxu0 %v1729_v58  ;;  %v1754_v22 = vor.u32 %v1475_v15, %v1403_v16  ;;  %v1377_v49 = vld [vmem:[#allocation2 + $0x40] sm:$0xf]  ;;  %v1470_v50 = vld [vmem:[#allocation2 + $0x44] sm:$0xf0]  ;;  %v1469_v53 = vld [vmem:[#allocation2 + $0x44] sm:$0xf] }
  0x15   :  { %204 = vmatpush.bf16.msra.mxu2 %v1686_v24  ;;  %217 = vmatpush.bf16.msra.mxu3 %v1689_v25  ;;  %v1379_v54 = vld [vmem:[#allocation2 + $0x48] sm:$0xf0]  ;;  %vm119_vm0 = vcmask 523264   ;;  %v1310_v9 = vld [vmem:[%s2133_s2 + $0x2] ss:$8 sm:$0x3] }
  0x16   :  { %141 = vmatpush.bf16.msra.mxu1 %v1733_v62  ;;  %v1785_v55 = vor.u32 %v1469_v53, %v1379_v54  ;;  %v1825_v10 = vperm.slane %v1310_v9, 0  ;;  %vm1294_vm1 = vcmask 517120   ;;  %vm1302_vm2 = vcmask 1024  }
  0x18   :  { %205 = vmatmul.bf16.vlgmr.msra.gmra.mxu2 %v1640_v0  ;;  %218 = vmatmul.bf16.vlgmr.msra.gmra.mxu3 %v1640_v0 }
  0x19   :  { %353 = vmatpush.bf16.msrb.mxu2 %v1724_v52  ;;  %366 = vmatpush.bf16.msrb.mxu3 %v1726_v56 }
  0x1a   :  { %129 = vmatpush.bf16.msra.mxu0 %v1737_v3  ;;  %142 = vmatpush.bf16.msra.mxu1 %v1741_v7 }
  0x1d   :  { %354 = vmatpush.bf16.msrb.mxu2 %v1729_v58  ;;  %367 = vmatpush.bf16.msrb.mxu3 %v1733_v62 }
  0x1e   :  { %130 = vmatpush.bf16.msra.mxu0 %v1745_v17  ;;  %143 = vmatpush.bf16.msra.mxu1 %v1749_v20 }
  0x21   :  { %355 = vmatpush.bf16.msrb.mxu2 %v1737_v3  ;;  %368 = vmatpush.bf16.msrb.mxu3 %v1741_v7 }
  0x22   :  { %300 = vmatpush.bf16.msrb.mxu0 %v1751_v21  ;;  %313 = vmatpush.bf16.msrb.mxu1 %v1754_v22 }
  0x23   :  { %131 = vmatmul.bf16.vlgmr.msra.gmra.mxu0 %v1640_v0  ;;  %144 = vmatmul.bf16.vlgmr.msra.gmra.mxu1 %v1640_v0  ;;  %v1782_v0 = vor.u32 %v1470_v50, %v1377_v49 }
  0x25   :  { %356 = vmatpush.bf16.msrb.mxu2 %v1745_v17  ;;  %369 = vmatpush.bf16.msrb.mxu3 %v1749_v20 }
  0x29   :  { %436 = vmatpush.bf16.msra.mxu2 %v1751_v21  ;;  %449 = vmatpush.bf16.msra.mxu3 %v1754_v22 }
  0x79   :  { %v39_v28 = vpop.permute.xlu0 %38 }
  0x7a   :  { %v51_v31 = vmul.f32 %v47_v27, %v39_v28  ;;  %v52_v33 = vmul.f32 %v48_v30, %v39_v28  ;;  %v1474_v28 = vld [vmem:[#allocation2 + $0x64] sm:$0xf0] }
  0x7c   :  { %v1715_v35 = vadd.f32 %v56_v32, %v51_v31  ;;  %v1719_v37 = vadd.f32 %v57_v34, %v52_v33  ;;  %v1473_v31 = vld [vmem:[#allocation2 + $0x64] sm:$0xf]  ;;  %v1395_v33 = vld [vmem:[#allocation2 + $0x68] sm:$0xf0] }
  0x9b   :  { %v206_v36 = vpop.f32.mrf.mxu2  ;;  %v219_v39 = vpop.f32.mrf.mxu3 }
  0x9c   :  { %v207_v38 = vadd.f32 %v206_v36, %v1715_v35  ;;  %v220_v41 = vadd.f32 %v219_v39, %v1719_v37  ;;  %v1760_v36 = vor.u32 %v1474_v28, %v1393_v23  ;;  %v1763_v39 = vor.u32 %v1473_v31, %v1395_v33 }
  0x9d   :  { %v1828_v23 = vperm.slane %v1310_v9, 1 }
  0x9e   :  { %v223_v40 = vmul.f32 0.5, %v207_v38  ;;  %v228_v2 = vmul.f32 0.5, %v220_v41  ;;  %301 = vmatpush.bf16.msrb.mxu0 %v1760_v36  ;;  %314 = vmatpush.bf16.msrb.mxu1 %v1763_v39 }
  0x9f   :  { %437 = vmatpush.bf16.msra.mxu2 %v1760_v36  ;;  %450 = vmatpush.bf16.msra.mxu3 %v1763_v39 }
  0xa0   :  { %1483 = vtanh.f32 %v223_v40  ;;  %v1385_v40 = vld [vmem:[#allocation2 + $0x50] sm:$0xf]  ;;  %v132_v63 = vpop.f32.mrf.mxu0  ;;  %v145_v1 = vpop.f32.mrf.mxu1 }
  0xa1   :  { %1485 = vtanh.f32 %v220_v41  ;;  %v1472_v41 = vld [vmem:[#allocation2 + $0x54] sm:$0xf0] }
  0xa2   :  { %1487 = vtanh.f32 %v228_v2 }
  0xa3   :  { %v208_v42 = vpop.f32.mrf.mxu2  ;;  %v221_v43 = vpop.f32.mrf.mxu3 }
  0xa4   :  { %v1471_v43 = vld [vmem:[#allocation2 + $0x54] sm:$0xf] }
  0xa6   :  { %v1484_v44 = vpop.eup %1483 }
  0xa7   :  { %v225_v45 = vmul.f32 0.5, %v1484_v44  ;;  %v1486_v47 = vpop.eup %1485  ;;  %v1387_v44 = vld [vmem:[#allocation2 + $0x58] sm:$0xf0] }
  0xa8   :  { %v134_v5 = vpop.f32.mrf.mxu0  ;;  %v147_v6 = vpop.f32.mrf.mxu1 }
  0xa9   :  { %v226_v46 = vadd.f32 0.5, %v225_v45  ;;  %v1488_v45 = vpop.eup %1487 }
  0xaa   :  { %v230_v51 = vmul.f32 0.5, %v1488_v45 }
  0xab   :  { %v233_v48 = vmul.f32 %v1486_v47, %v226_v46  ;;  %v232_v38 = vmul.f32 0.0, %v226_v46  ;;  %v1773_v46 = vor.u32 %v1472_v41, %v1385_v40 }
  0xac   :  { %v231_v57 = vadd.f32 0.5, %v230_v51 }
  0xad   :  { %235 = vrot.lane.b32.xlu0 %v233_v48, %s1641_s24  ;;  %v1777_v48 = vor.u32 %v1471_v43, %v1387_v44  ;;  %302 = vmatpush.bf16.msrb.mxu0 %v1773_v46  ;;  %v377_v43 = vrot.slane %v1715_v35, 2 }
  0xae   :  { %438 = vmatpush.bf16.msra.mxu2 %v1773_v46 }
  0xaf   :  { %315 = vmatpush.bf16.msrb.mxu1 %v1777_v48  ;;  %451 = vmatpush.bf16.msra.mxu3 %v1777_v48 }
  0xb1   :  { %303 = vmatpush.bf16.msrb.mxu0 %v1782_v0 }
  0xb2   :  { %439 = vmatpush.bf16.msra.mxu2 %v1782_v0 }
  0xb3   :  { %316 = vmatpush.bf16.msrb.mxu1 %v1785_v55  ;;  %452 = vmatpush.bf16.msra.mxu3 %v1785_v55 }
  0xb5   :  { %385 = vmatpush.bf16.msra.mxu0 %v1666_v4 }
  0xb7   :  { %398 = vmatpush.bf16.msra.mxu1 %v1668_v8 }
  0xb9   :  { %386 = vmatpush.bf16.msra.mxu0 %v1671_v11 }
  0xbb   :  { %399 = vmatpush.bf16.msra.mxu1 %v1674_v12 }
  0xbd   :  { %387 = vmatpush.bf16.msra.mxu0 %v1680_v18 }
  0xbf   :  { %400 = vmatpush.bf16.msra.mxu1 %v1683_v19 }
  0xc1   :  { %388 = vmatpush.bf16.msra.mxu0 %v1686_v24 }
  0xc3   :  { %401 = vmatpush.bf16.msra.mxu1 %v1689_v25 }
 0x11f   :  { %v236_v42 = vpop.permute.xlu0 %235 }
 0x120   :  { %v1768_v47 = vadd.f32 %v236_v42, %v232_v38 }
 0x122   :  { %1489 = vtanh.f32 %v1768_v47 }
 0x128   :  { %v1490_v59 = vpop.eup %1489 }
 0x129   :  { %v240_v60 = vmul.f32 %v1490_v59, %v231_v57  ;;  %v378_v57 = vrot.slane %v1719_v37, 2 }
 0x12b   :  { %v241_v61 = vpack.c.bf16 %v240_v60, %v240_v60 }
 0x12d   :  { %251 = vrot.lane.b32.xlu1 %v241_v61, %s1641_s24 }
 0x19f   :  { %v252_v2 = vpop.permute.xlu1 %251 }
 0x1a0   :  { %1407 = vmatmul.msk.bf16.vlgmr.msrb.gmra.mxu0 %vm119_vm0, %v252_v2  ;;  %1408 = vmatmul.msk.bf16.vlgmr.msrb.gmra.mxu1 %vm119_vm0, %v252_v2 }
 0x1a1   :  { %489 = vmatpush.bf16.msrb.mxu0 %v1724_v52  ;;  %502 = vmatpush.bf16.msrb.mxu1 %v1726_v56 }
 0x1a5   :  { %490 = vmatpush.bf16.msrb.mxu0 %v1729_v58  ;;  %503 = vmatpush.bf16.msrb.mxu1 %v1733_v62 }
 0x1a9   :  { %491 = vmatpush.bf16.msrb.mxu0 %v1737_v3  ;;  %504 = vmatpush.bf16.msrb.mxu1 %v1741_v7 }
 0x1ad   :  { %492 = vmatpush.bf16.msrb.mxu0 %v1745_v17  ;;  %505 = vmatpush.bf16.msrb.mxu1 %v1749_v20 }
 0x1b0   :  { %1411 = vmatmul.msk.bf16.vlgmr.msra.gmra.mxu0 %vm119_vm0, %v252_v2  ;;  %1412 = vmatmul.msk.bf16.vlgmr.msra.gmra.mxu1 %vm119_vm0, %v252_v2 }
 0x1b1   :  { %570 = vmatpush.bf16.msra.mxu0 %v1751_v21  ;;  %583 = vmatpush.bf16.msra.mxu1 %v1754_v22 }
 0x1b5   :  { %571 = vmatpush.bf16.msra.mxu0 %v1760_v36  ;;  %584 = vmatpush.bf16.msra.mxu1 %v1763_v39 }
 0x1b9   :  { %572 = vmatpush.bf16.msra.mxu0 %v1773_v46  ;;  %585 = vmatpush.bf16.msra.mxu1 %v1777_v48 }
 0x1bd   :  { %573 = vmatpush.bf16.msra.mxu0 %v1782_v0  ;;  %586 = vmatpush.bf16.msra.mxu1 %v1785_v55 }
 0x21d   :  { %v305_v13 = vpop.f32.mrf.mxu0  ;;  %v318_v14 = vpop.f32.mrf.mxu1 }
 0x21e   :  { %v306_v15 = vadd.f32 %v305_v13, %v132_v63  ;;  %v319_v28 = vadd.f32 %v318_v14, %v145_v1 }
 0x220   :  { %v322_v16 = vadd.f32 %v306_v15, %v1825_v10  ;;  %v323_v33 = vadd.f32 %v319_v28, %v1828_v23 }
 0x222   :  { %v324_v31 = vmul.f32 0.5, %v322_v16  ;;  %v329_v16 = vmul.f32 0.5, %v323_v33 }
 0x224   :  { %1491 = vtanh.f32 %v324_v31 }
 0x225   :  { %v307_v38 = vpop.f32.mrf.mxu0  ;;  %v320_v40 = vpop.f32.mrf.mxu1  ;;  %1493 = vtanh.f32 %v323_v33 }
 0x22a   :  { %v1492_v41 = vpop.eup %1491 }
 0x22b   :  { %v326_v42 = vmul.f32 0.5, %v1492_v41  ;;  %v1494_v50 = vpop.eup %1493 }
 0x22d   :  { %v327_v44 = vadd.f32 0.5, %v326_v42  ;;  %v390_v45 = vpop.f32.mrf.mxu0  ;;  %v403_v49 = vpop.f32.mrf.mxu1 }
 0x22e   :  { %v391_v51 = vadd.f32 %v390_v45, %v377_v43  ;;  %v404_v59 = vadd.f32 %v403_v49, %v378_v57 }
 0x22f   :  { %v334_v53 = vmul.f32 %v1494_v50, %v327_v44  ;;  %v333_v41 = vmul.f32 0.0, %v327_v44 }
 0x230   :  { %v407_v54 = vmul.f32 0.5, %v391_v51  ;;  %v412_v9 = vmul.f32 0.5, %v404_v59 }
 0x231   :  { %336 = vrot.lane.b32.xlu1 %v334_v53, %s1641_s24 }
 0x232   :  { %1495 = vtanh.f32 %v407_v54 }
 0x233   :  { %1497 = vtanh.f32 %v404_v59 }
 0x234   :  { %1499 = vtanh.f32 %v412_v9 }
 0x235   :  { %v392_v60 = vpop.f32.mrf.mxu0  ;;  %v405_v61 = vpop.f32.mrf.mxu1 }
 0x238   :  { %v1496_v63 = vpop.eup %1495 }
 0x239   :  { %v409_v1 = vmul.f32 0.5, %v1496_v63  ;;  %v1498_v5 = vpop.eup %1497 }
 0x23a   :  { %v1500_v15 = vpop.eup %1499 }
 0x23b   :  { %v410_v2 = vadd.f32 0.5, %v409_v1  ;;  %v414_v31 = vmul.f32 0.5, %v1500_v15 }
 0x23d   :  { %v417_v6 = vmul.f32 %v1498_v5, %v410_v2  ;;  %v416_v13 = vmul.f32 %v410_v2, %v1768_v47  ;;  %v415_v38 = vadd.f32 0.5, %v414_v31 }
 0x23f   :  { %419 = vrot.lane.b32.xlu2 %v417_v6, %s1641_s24 }
 0x299   :  { %v420_v14 = vpop.permute.xlu2 %419 }
 0x29a   :  { %v1836_v28 = vadd.f32 %v420_v14, %v416_v13 }
 0x29c   :  { %1501 = vtanh.f32 %v1836_v28 }
 0x29d   :  { %1503 = vtanh.f32 %v329_v16 }
 0x2a2   :  { %v1502_v40 = vpop.eup %1501 }
 0x2a3   :  { %v337_v42 = vpop.permute.xlu1 %336  ;;  %v424_v43 = vmul.f32 %v1502_v40, %v415_v38  ;;  %v1504_v45 = vpop.eup %1503  ;;  %v511_v40 = vrot.slane %v1715_v35, 4 }
 0x2a4   :  { %v1839_v49 = vadd.f32 %v337_v42, %v333_v41  ;;  %v331_v47 = vmul.f32 0.5, %v1504_v45 }
 0x2a5   :  { %v425_v50 = vpack.c.bf16 %v424_v43, %v424_v43 }
 0x2a6   :  { %1505 = vtanh.f32 %v1839_v49  ;;  %v332_v33 = vadd.f32 0.5, %v331_v47 }
 0x2a7   :  { %427 = vrot.lane.b32.xlu0 %v425_v50, %s1641_s24 }
 0x2ac   :  { %v1506_v51 = vpop.eup %1505 }
 0x2ad   :  { %v341_v53 = vmul.f32 %v1506_v51, %v332_v33  ;;  %v512_v51 = vrot.slane %v1719_v37, 4 }
 0x2af   :  { %v342_v54 = vpack.c.bf16 %v341_v53, %v341_v53 }
 0x2b1   :  { %344 = vrot.lane.b32.xlu2 %v342_v54, %s1641_s24 }
 0x30b   :  { %v345_v57 = vpop.permute.xlu2 %344 }
 0x30c   :  { %1409 = vmatmul.msk.bf16.vlgmr.msrb.gmra.mxu2 %vm119_vm0, %v345_v57  ;;  %1410 = vmatmul.msk.bf16.vlgmr.msrb.gmra.mxu3 %vm119_vm0, %v345_v57 }
 0x30d   :  { %519 = vmatpush.bf16.msrb.mxu2 %v1666_v4  ;;  %532 = vmatpush.bf16.msrb.mxu3 %v1668_v8 }
 0x311   :  { %520 = vmatpush.bf16.msrb.mxu2 %v1671_v11  ;;  %533 = vmatpush.bf16.msrb.mxu3 %v1674_v12 }
 0x315   :  { %521 = vmatpush.bf16.msrb.mxu2 %v1680_v18  ;;  %534 = vmatpush.bf16.msrb.mxu3 %v1683_v19 }
 0x319   :  { %522 = vmatpush.bf16.msrb.mxu2 %v1686_v24  ;;  %535 = vmatpush.bf16.msrb.mxu3 %v1689_v25  ;;  %v428_v44 = vpop.permute.xlu0 %427 }
 0x31c   :  { %1413 = vmatmul.msk.bf16.vlgmr.msra.gmra.mxu2 %vm119_vm0, %v428_v44  ;;  %1414 = vmatmul.msk.bf16.vlgmr.msra.gmra.mxu3 %vm119_vm0, %v428_v44 }
 0x31d   :  { %623 = vmatpush.bf16.msra.mxu2 %v1724_v52  ;;  %636 = vmatpush.bf16.msra.mxu3 %v1726_v56 }
 0x321   :  { %624 = vmatpush.bf16.msra.mxu2 %v1729_v58  ;;  %637 = vmatpush.bf16.msra.mxu3 %v1733_v62 }
 0x325   :  { %625 = vmatpush.bf16.msra.mxu2 %v1737_v3  ;;  %638 = vmatpush.bf16.msra.mxu3 %v1741_v7 }
 0x329   :  { %626 = vmatpush.bf16.msra.mxu2 %v1745_v17  ;;  %639 = vmatpush.bf16.msra.mxu3 %v1749_v20 }
 0x32c   :  { %1417 = vmatmul.msk.bf16.vlgmr.msrb.gmra.mxu2 %vm119_vm0, %v428_v44  ;;  %1418 = vmatmul.msk.bf16.vlgmr.msrb.gmra.mxu3 %vm119_vm0, %v428_v44 }
 0x32d   :  { %704 = vmatpush.bf16.msrb.mxu2 %v1751_v21  ;;  %717 = vmatpush.bf16.msrb.mxu3 %v1754_v22 }
 0x331   :  { %705 = vmatpush.bf16.msrb.mxu2 %v1760_v36  ;;  %718 = vmatpush.bf16.msrb.mxu3 %v1763_v39 }
 0x335   :  { %706 = vmatpush.bf16.msrb.mxu2 %v1773_v46  ;;  %719 = vmatpush.bf16.msrb.mxu3 %v1777_v48 }
 0x339   :  { %707 = vmatpush.bf16.msrb.mxu2 %v1782_v0  ;;  %720 = vmatpush.bf16.msrb.mxu3 %v1785_v55 }
 0x38f   :  { %v358_v59 = vpop.f32.mrf.mxu2  ;;  %v371_v60 = vpop.f32.mrf.mxu3 }
 0x397   :  { %v360_v61 = vpop.f32.mrf.mxu2  ;;  %v373_v63 = vpop.f32.mrf.mxu3 }
 0x39f   :  { %v441_v1 = vpop.f32.mrf.mxu2  ;;  %v454_v2 = vpop.f32.mrf.mxu3 }
 0x3a0   :  { %v442_v5 = vadd.f32 %v441_v1, %v358_v59  ;;  %v455_v9 = vadd.f32 %v454_v2, %v371_v60 }
 0x3a2   :  { %v458_v6 = vadd.f32 %v442_v5, %v1825_v10  ;;  %v459_v14 = vadd.f32 %v455_v9, %v1828_v23 }
 0x3a4   :  { %v460_v13 = vmul.f32 0.5, %v458_v6  ;;  %v465_v9 = vmul.f32 0.5, %v459_v14 }
 0x3a6   :  { %1507 = vtanh.f32 %v460_v13 }
 0x3a7   :  { %v443_v15 = vpop.f32.mrf.mxu2  ;;  %v456_v16 = vpop.f32.mrf.mxu3  ;;  %1509 = vtanh.f32 %v459_v14 }
 0x3ac   :  { %v1508_v31 = vpop.eup %1507 }
 0x3ad   :  { %v462_v38 = vmul.f32 0.5, %v1508_v31  ;;  %v1510_v45 = vpop.eup %1509 }
 0x3af   :  { %v463_v41 = vadd.f32 0.5, %v462_v38  ;;  %v524_v42 = vpop.f32.mrf.mxu2  ;;  %v537_v43 = vpop.f32.mrf.mxu3 }
 0x3b0   :  { %v525_v50 = vadd.f32 %v524_v42, %v511_v40  ;;  %v538_v53 = vadd.f32 %v537_v43, %v512_v51 }
 0x3b1   :  { %v470_v47 = vmul.f32 %v1510_v45, %v463_v41  ;;  %v469_v38 = vmul.f32 %v463_v41, %v1839_v49 }
 0x3b2   :  { %v541_v33 = vmul.f32 0.5, %v525_v50  ;;  %v546_v1 = vmul.f32 0.5, %v538_v53 }
 0x3b3   :  { %472 = vrot.lane.b32.xlu1 %v470_v47, %s1641_s24 }
 0x3b4   :  { %1511 = vtanh.f32 %v541_v33 }
 0x3b5   :  { %1513 = vtanh.f32 %v538_v53 }
 0x3b6   :  { %1515 = vtanh.f32 %v546_v1 }
 0x3b7   :  { %v526_v54 = vpop.f32.mrf.mxu2  ;;  %v539_v57 = vpop.f32.mrf.mxu3 }
 0x3ba   :  { %v1512_v44 = vpop.eup %1511 }
 0x3bb   :  { %v543_v59 = vmul.f32 0.5, %v1512_v44  ;;  %v1514_v61 = vpop.eup %1513 }
 0x3bc   :  { %v1516_v6 = vpop.eup %1515 }
 0x3bd   :  { %v544_v60 = vadd.f32 0.5, %v543_v59  ;;  %v548_v15 = vmul.f32 0.5, %v1516_v6 }
 0x3bf   :  { %v551_v63 = vmul.f32 %v1514_v61, %v544_v60  ;;  %v550_v2 = vmul.f32 %v544_v60, %v1836_v28  ;;  %v549_v16 = vadd.f32 0.5, %v548_v15 }
 0x3c1   :  { %553 = vrot.lane.b32.xlu2 %v551_v63, %s1641_s24 }
 0x41b   :  { %v554_v5 = vpop.permute.xlu2 %553 }
 0x41c   :  { %v1881_v13 = vadd.f32 %v554_v5, %v550_v2 }
 0x41e   :  { %1517 = vtanh.f32 %v1881_v13 }
 0x41f   :  { %1519 = vtanh.f32 %v465_v9 }
 0x424   :  { %v1518_v31 = vpop.eup %1517 }
 0x425   :  { %v473_v40 = vpop.permute.xlu1 %472  ;;  %v558_v42 = vmul.f32 %v1518_v31, %v549_v16  ;;  %v1520_v43 = vpop.eup %1519  ;;  %v645_v31 = vrot.slane %v1715_v35, 6 }
 0x426   :  { %v1885_v45 = vadd.f32 %v473_v40, %v469_v38  ;;  %v467_v28 = vmul.f32 0.5, %v1520_v43 }
 0x427   :  { %v559_v50 = vpack.c.bf16 %v558_v42, %v558_v42 }
 0x428   :  { %1521 = vtanh.f32 %v1885_v45  ;;  %v468_v14 = vadd.f32 0.5, %v467_v28 }
 0x429   :  { %561 = vrot.lane.b32.xlu1 %v559_v50, %s1641_s24 }
 0x42e   :  { %v1522_v47 = vpop.eup %1521 }
 0x42f   :  { %v477_v33 = vmul.f32 %v1522_v47, %v468_v14  ;;  %v646_v47 = vrot.slane %v1719_v37, 6 }
 0x431   :  { %v478_v51 = vpack.c.bf16 %v477_v33, %v477_v33 }
 0x433   :  { %480 = vrot.lane.b32.xlu0 %v478_v51, %s1641_s24 }
 0x49b   :  { %v562_v49 = vpop.permute.xlu1 %561 }
 0x4a5   :  { %v481_v53 = vpop.permute.xlu0 %480 }
 0x4a6   :  { %1415 = vmatmul.msk.bf16.vlgmr.msrb.gmra.mxu0 %vm119_vm0, %v481_v53  ;;  %1416 = vmatmul.msk.bf16.vlgmr.msrb.gmra.mxu1 %vm119_vm0, %v481_v53 }
 0x4a7   :  { %653 = vmatpush.bf16.msrb.mxu0 %v1666_v4  ;;  %666 = vmatpush.bf16.msrb.mxu1 %v1668_v8 }
 0x4ab   :  { %654 = vmatpush.bf16.msrb.mxu0 %v1671_v11  ;;  %667 = vmatpush.bf16.msrb.mxu1 %v1674_v12 }
 0x4af   :  { %655 = vmatpush.bf16.msrb.mxu0 %v1680_v18  ;;  %668 = vmatpush.bf16.msrb.mxu1 %v1683_v19 }
 0x4b3   :  { %656 = vmatpush.bf16.msrb.mxu0 %v1686_v24  ;;  %669 = vmatpush.bf16.msrb.mxu1 %v1689_v25 }
 0x4b6   :  { %1419 = vmatmul.msk.bf16.vlgmr.msra.gmra.mxu0 %vm119_vm0, %v562_v49  ;;  %1420 = vmatmul.msk.bf16.vlgmr.msra.gmra.mxu1 %vm119_vm0, %v562_v49 }
 0x4b7   :  { %757 = vmatpush.bf16.msra.mxu0 %v1724_v52  ;;  %770 = vmatpush.bf16.msra.mxu1 %v1726_v56 }
 0x4bb   :  { %758 = vmatpush.bf16.msra.mxu0 %v1729_v58  ;;  %771 = vmatpush.bf16.msra.mxu1 %v1733_v62 }
 0x4bf   :  { %759 = vmatpush.bf16.msra.mxu0 %v1737_v3  ;;  %772 = vmatpush.bf16.msra.mxu1 %v1741_v7 }
 0x4c3   :  { %760 = vmatpush.bf16.msra.mxu0 %v1745_v17  ;;  %773 = vmatpush.bf16.msra.mxu1 %v1749_v20 }
 0x4c6   :  { %1423 = vmatmul.msk.bf16.vlgmr.msrb.gmra.mxu0 %vm119_vm0, %v562_v49  ;;  %1424 = vmatmul.msk.bf16.vlgmr.msrb.gmra.mxu1 %vm119_vm0, %v562_v49 }
 0x4c7   :  { %834 = vmatpush.bf16.msrb.mxu0 %v1751_v21  ;;  %847 = vmatpush.bf16.msrb.mxu1 %v1754_v22 }
 0x4cb   :  { %835 = vmatpush.bf16.msrb.mxu0 %v1760_v36  ;;  %848 = vmatpush.bf16.msrb.mxu1 %v1763_v39 }
 0x4cf   :  { %836 = vmatpush.bf16.msrb.mxu0 %v1773_v46  ;;  %849 = vmatpush.bf16.msrb.mxu1 %v1777_v48 }
 0x4d3   :  { %837 = vmatpush.bf16.msrb.mxu0 %v1782_v0  ;;  %850 = vmatpush.bf16.msrb.mxu1 %v1785_v55 }
 0x523   :  { %v494_v41 = vpop.f32.mrf.mxu0  ;;  %v507_v54 = vpop.f32.mrf.mxu1 }
 0x52b   :  { %v496_v57 = vpop.f32.mrf.mxu0  ;;  %v509_v44 = vpop.f32.mrf.mxu1 }
 0x52c   :  { %v35_v44 = vld [vmem:[%s2131_s0 + $0x8] sm:$0xff] }
 0x533   :  { %v575_v59 = vpop.f32.mrf.mxu0  ;;  %v588_v60 = vpop.f32.mrf.mxu1 }
 0x534   :  { %v576_v61 = vadd.f32 %v575_v59, %v494_v41  ;;  %v589_v1 = vadd.f32 %v588_v60, %v507_v54 }
 0x536   :  { %v592_v63 = vadd.f32 %v576_v61, %v1825_v10  ;;  %v593_v5 = vadd.f32 %v589_v1, %v1828_v23 }
 0x538   :  { %v594_v2 = vmul.f32 0.5, %v592_v63  ;;  %v599_v37 = vmul.f32 0.5, %v593_v5 }
 0x53a   :  { %1523 = vtanh.f32 %v594_v2 }
 0x53b   :  { %v577_v6 = vpop.f32.mrf.mxu0  ;;  %v590_v9 = vpop.f32.mrf.mxu1  ;;  %1525 = vtanh.f32 %v593_v5 }
 0x540   :  { %v1524_v15 = vpop.eup %1523 }
 0x541   :  { %v596_v16 = vmul.f32 0.5, %v1524_v15  ;;  %v1526_v43 = vpop.eup %1525 }
 0x543   :  { %v597_v38 = vadd.f32 0.5, %v596_v16  ;;  %v658_v40 = vpop.f32.mrf.mxu0  ;;  %v671_v42 = vpop.f32.mrf.mxu1 }
 0x544   :  { %v659_v50 = vadd.f32 %v658_v40, %v645_v31  ;;  %v672_v33 = vadd.f32 %v671_v42, %v646_v47 }
 0x545   :  { %v604_v28 = vmul.f32 %v1526_v43, %v597_v38  ;;  %v603_v59 = vmul.f32 %v597_v38, %v1885_v45 }
 0x546   :  { %v675_v14 = vmul.f32 0.5, %v659_v50  ;;  %v680_v16 = vmul.f32 0.5, %v672_v33 }
 0x547   :  { %606 = vrot.lane.b32.xlu2 %v604_v28, %s1641_s24 }
 0x548   :  { %1527 = vtanh.f32 %v675_v14 }
 0x549   :  { %1529 = vtanh.f32 %v672_v33 }
 0x54a   :  { %1531 = vtanh.f32 %v599_v37 }
 0x54b   :  { %v660_v51 = vpop.f32.mrf.mxu0  ;;  %v673_v53 = vpop.f32.mrf.mxu1 }
 0x54e   :  { %v1528_v49 = vpop.eup %1527 }
 0x54f   :  { %v677_v41 = vmul.f32 0.5, %v1528_v49  ;;  %v1530_v35 = vpop.eup %1529 }
 0x550   :  { %v1532_v61 = vpop.eup %1531 }
 0x551   :  { %v678_v54 = vadd.f32 0.5, %v677_v41  ;;  %v601_v1 = vmul.f32 0.5, %v1532_v61 }
 0x553   :  { %v685_v57 = vmul.f32 %v1530_v35, %v678_v54  ;;  %v602_v2 = vadd.f32 0.5, %v601_v1  ;;  %v684_v5 = vmul.f32 %v678_v54, %v1881_v13 }
 0x555   :  { %687 = vrot.lane.b32.xlu0 %v685_v57, %s1641_s24 }
 0x55d   :  { %43 = vperm.xlu0 %1482, %v35_v44  }
 0x5a1   :  { %v607_v60 = vpop.permute.xlu2 %606 }
 0x5a2   :  { %v1930_v63 = vadd.f32 %v607_v60, %v603_v59 }
 0x5a4   :  { %1533 = vtanh.f32 %v1930_v63 }
 0x5a5   :  { %1535 = vtanh.f32 %v680_v16 }
 0x5aa   :  { %v1534_v6 = vpop.eup %1533 }
 0x5ab   :  { %v611_v9 = vmul.f32 %v1534_v6, %v602_v2  ;;  %v1536_v40 = vpop.eup %1535 }
 0x5ac   :  { %v682_v38 = vmul.f32 0.5, %v1536_v40 }
 0x5ad   :  { %v612_v15 = vpack.c.bf16 %v611_v9, %v611_v9 }
 0x5ae   :  { %v683_v42 = vadd.f32 0.5, %v682_v38 }
 0x5af   :  { %614 = vrot.lane.b32.xlu1 %v612_v15, %s1641_s24 }
 0x5c7   :  { %v688_v31 = vpop.permute.xlu0 %687 }
 0x5c8   :  { %v1935_v45 = vadd.f32 %v688_v31, %v684_v5 }
 0x5ca   :  { %1537 = vtanh.f32 %v1935_v45 }
 0x5cf   :  { %v44_v37 = vpop.permute.xlu0 %43 }
 0x5d0   :  { %v1538_v43 = vpop.eup %1537  ;;  %v53_v1 = vmul.f32 %v47_v27, %v44_v37  ;;  %v54_v9 = vmul.f32 %v48_v30, %v44_v37 }
 0x5d1   :  { %v692_v50 = vmul.f32 %v1538_v43, %v683_v42 }
 0x5d2   :  { %v1977_v15 = vadd.f32 %v56_v32, %v53_v1  ;;  %v1982_v27 = vadd.f32 %v57_v34, %v54_v9 }
 0x5d3   :  { %v693_v28 = vpack.c.bf16 %v692_v50, %v692_v50 }
 0x5d5   :  { %695 = vrot.lane.b32.xlu2 %v693_v28, %s1641_s24 }
 0x621   :  { %v615_v14 = vpop.permute.xlu1 %614 }
 0x622   :  { %1421 = vmatmul.msk.bf16.vlgmr.msra.gmra.mxu2 %vm119_vm0, %v615_v14  ;;  %1422 = vmatmul.msk.bf16.vlgmr.msra.gmra.mxu3 %vm119_vm0, %v615_v14 }
 0x623   :  { %783 = vmatpush.bf16.msra.mxu2 %v1666_v4  ;;  %796 = vmatpush.bf16.msra.mxu3 %v1668_v8 }
 0x627   :  { %784 = vmatpush.bf16.msra.mxu2 %v1671_v11  ;;  %797 = vmatpush.bf16.msra.mxu3 %v1674_v12 }
 0x62b   :  { %785 = vmatpush.bf16.msra.mxu2 %v1680_v18  ;;  %798 = vmatpush.bf16.msra.mxu3 %v1683_v19 }
 0x62f   :  { %786 = vmatpush.bf16.msra.mxu2 %v1686_v24  ;;  %799 = vmatpush.bf16.msra.mxu3 %v1689_v25  ;;  %v696_v13 = vpop.permute.xlu2 %695 }
 0x632   :  { %1425 = vmatmul.msk.bf16.vlgmr.msrb.gmra.mxu2 %vm119_vm0, %v696_v13  ;;  %1426 = vmatmul.msk.bf16.vlgmr.msrb.gmra.mxu3 %vm119_vm0, %v696_v13 }
 0x633   :  { %887 = vmatpush.bf16.msrb.mxu2 %v1724_v52  ;;  %900 = vmatpush.bf16.msrb.mxu3 %v1726_v56 }
 0x637   :  { %888 = vmatpush.bf16.msrb.mxu2 %v1729_v58  ;;  %901 = vmatpush.bf16.msrb.mxu3 %v1733_v62 }
 0x63b   :  { %889 = vmatpush.bf16.msrb.mxu2 %v1737_v3  ;;  %902 = vmatpush.bf16.msrb.mxu3 %v1741_v7 }
 0x63f   :  { %890 = vmatpush.bf16.msrb.mxu2 %v1745_v17  ;;  %903 = vmatpush.bf16.msrb.mxu3 %v1749_v20 }
 0x642   :  { %1429 = vmatmul.msk.bf16.vlgmr.msra.gmra.mxu2 %vm119_vm0, %v696_v13  ;;  %1430 = vmatmul.msk.bf16.vlgmr.msra.gmra.mxu3 %vm119_vm0, %v696_v13 }
 0x643   :  { %970 = vmatpush.bf16.msra.mxu2 %v1751_v21  ;;  %983 = vmatpush.bf16.msra.mxu3 %v1754_v22 }
 0x647   :  { %971 = vmatpush.bf16.msra.mxu2 %v1760_v36  ;;  %984 = vmatpush.bf16.msra.mxu3 %v1763_v39 }
 0x64b   :  { %972 = vmatpush.bf16.msra.mxu2 %v1773_v46  ;;  %985 = vmatpush.bf16.msra.mxu3 %v1777_v48 }
 0x64f   :  { %973 = vmatpush.bf16.msra.mxu2 %v1782_v0  ;;  %986 = vmatpush.bf16.msra.mxu3 %v1785_v55 }
 0x6a5   :  { %v628_v47 = vpop.f32.mrf.mxu2  ;;  %v641_v33 = vpop.f32.mrf.mxu3 }
 0x6ad   :  { %v630_v51 = vpop.f32.mrf.mxu2  ;;  %v643_v53 = vpop.f32.mrf.mxu3 }
 0x6b5   :  { %v709_v49 = vpop.f32.mrf.mxu2  ;;  %v722_v41 = vpop.f32.mrf.mxu3 }
 0x6b6   :  { %v710_v54 = vadd.f32 %v709_v49, %v628_v47  ;;  %v723_v57 = vadd.f32 %v722_v41, %v641_v33 }
 0x6b8   :  { %v726_v35 = vadd.f32 %v710_v54, %v1825_v10  ;;  %v727_v59 = vadd.f32 %v723_v57, %v1828_v23 }
 0x6ba   :  { %v728_v44 = vmul.f32 0.5, %v726_v35  ;;  %v733_v53 = vmul.f32 0.5, %v727_v59 }
 0x6bc   :  { %1539 = vtanh.f32 %v728_v44 }
 0x6bd   :  { %v711_v60 = vpop.f32.mrf.mxu2  ;;  %v724_v61 = vpop.f32.mrf.mxu3  ;;  %1541 = vtanh.f32 %v727_v59 }
 0x6c2   :  { %v1540_v2 = vpop.eup %1539 }
 0x6c3   :  { %v730_v6 = vmul.f32 0.5, %v1540_v2  ;;  %v1542_v40 = vpop.eup %1541 }
 0x6c5   :  { %v731_v16 = vadd.f32 0.5, %v730_v6  ;;  %v788_v5 = vpop.f32.mrf.mxu2  ;;  %v801_v31 = vpop.f32.mrf.mxu3 }
 0x6c6   :  { %v789_v38 = vadd.f32 %v788_v5, %v1977_v15  ;;  %v802_v26 = vadd.f32 %v801_v31, %v1982_v27 }
 0x6c7   :  { %v738_v42 = vmul.f32 %v1542_v40, %v731_v16  ;;  %v737_v57 = vmul.f32 %v731_v16, %v1930_v63 }
 0x6c8   :  { %v805_v43 = vmul.f32 0.5, %v789_v38  ;;  %v810_v33 = vmul.f32 0.5, %v802_v26 }
 0x6c9   :  { %740 = vrot.lane.b32.xlu1 %v738_v42, %s1641_s24 }
 0x6ca   :  { %1543 = vtanh.f32 %v805_v43 }
 0x6cb   :  { %1545 = vtanh.f32 %v802_v26 }
 0x6cc   :  { %1547 = vtanh.f32 %v810_v33 }
 0x6cd   :  { %v790_v30 = vpop.f32.mrf.mxu2  ;;  %v803_v32 = vpop.f32.mrf.mxu3 }
 0x6d0   :  { %v1544_v50 = vpop.eup %1543 }
 0x6d1   :  { %v807_v28 = vmul.f32 0.5, %v1544_v50  ;;  %v1546_v13 = vpop.eup %1545 }
 0x6d2   :  { %v1548_v51 = vpop.eup %1547 }
 0x6d3   :  { %v808_v14 = vadd.f32 0.5, %v807_v28  ;;  %v812_v41 = vmul.f32 0.5, %v1548_v51 }
 0x6d5   :  { %v815_v47 = vmul.f32 %v1546_v13, %v808_v14  ;;  %v814_v29 = vmul.f32 %v808_v14, %v1935_v45  ;;  %v813_v54 = vadd.f32 0.5, %v812_v41 }
 0x6d7   :  { %817 = vrot.lane.b32.xlu2 %v815_v47, %s1641_s24 }
 0x731   :  { %v818_v34 = vpop.permute.xlu2 %817 }
 0x732   :  { %v1988_v49 = vadd.f32 %v818_v34, %v814_v29  ;;  %v911_v29 = vrot.slane %v1977_v15, 2 }
 0x734   :  { %1549 = vtanh.f32 %v1988_v49 }
 0x735   :  { %1551 = vtanh.f32 %v733_v53 }
 0x73a   :  { %v1550_v35 = vpop.eup %1549 }
 0x73b   :  { %v741_v44 = vpop.permute.xlu1 %740  ;;  %v822_v37 = vmul.f32 %v1550_v35, %v813_v54  ;;  %v1552_v60 = vpop.eup %1551 }
 0x73c   :  { %v1992_v61 = vadd.f32 %v741_v44, %v737_v57  ;;  %v735_v45 = vmul.f32 0.5, %v1552_v60  ;;  %v912_v44 = vrot.slane %v1982_v27, 2 }
 0x73d   :  { %v823_v1 = vpack.c.bf16 %v822_v37, %v822_v37 }
 0x73e   :  { %1553 = vtanh.f32 %v1992_v61  ;;  %v736_v59 = vadd.f32 0.5, %v735_v45 }
 0x73f   :  { %825 = vrot.lane.b32.xlu1 %v823_v1, %s1641_s24 }
 0x744   :  { %v1554_v2 = vpop.eup %1553 }
 0x745   :  { %v745_v6 = vmul.f32 %v1554_v2, %v736_v59 }
 0x747   :  { %v746_v9 = vpack.c.bf16 %v745_v6, %v745_v6 }
 0x749   :  { %748 = vrot.lane.b32.xlu0 %v746_v9, %s1641_s24 }
 0x7b1   :  { %v826_v63 = vpop.permute.xlu1 %825 }
 0x7bb   :  { %v749_v5 = vpop.permute.xlu0 %748 }
 0x7bc   :  { %1427 = vmatmul.msk.bf16.vlgmr.msra.gmra.mxu0 %vm119_vm0, %v749_v5  ;;  %1428 = vmatmul.msk.bf16.vlgmr.msra.gmra.mxu1 %vm119_vm0, %v749_v5 }
 0x7bd   :  { %919 = vmatpush.bf16.msra.mxu0 %v1666_v4  ;;  %932 = vmatpush.bf16.msra.mxu1 %v1668_v8 }
 0x7c1   :  { %920 = vmatpush.bf16.msra.mxu0 %v1671_v11  ;;  %933 = vmatpush.bf16.msra.mxu1 %v1674_v12 }
 0x7c5   :  { %921 = vmatpush.bf16.msra.mxu0 %v1680_v18  ;;  %934 = vmatpush.bf16.msra.mxu1 %v1683_v19 }
 0x7c9   :  { %922 = vmatpush.bf16.msra.mxu0 %v1686_v24  ;;  %935 = vmatpush.bf16.msra.mxu1 %v1689_v25 }
 0x7cc   :  { %1431 = vmatmul.msk.bf16.vlgmr.msrb.gmra.mxu0 %vm119_vm0, %v826_v63  ;;  %1432 = vmatmul.msk.bf16.vlgmr.msrb.gmra.mxu1 %vm119_vm0, %v826_v63 }
 0x7cd   :  { %1023 = vmatpush.bf16.msrb.mxu0 %v1724_v52  ;;  %1036 = vmatpush.bf16.msrb.mxu1 %v1726_v56 }
 0x7d1   :  { %1024 = vmatpush.bf16.msrb.mxu0 %v1729_v58  ;;  %1037 = vmatpush.bf16.msrb.mxu1 %v1733_v62 }
 0x7d5   :  { %1025 = vmatpush.bf16.msrb.mxu0 %v1737_v3  ;;  %1038 = vmatpush.bf16.msrb.mxu1 %v1741_v7 }
 0x7d9   :  { %1026 = vmatpush.bf16.msrb.mxu0 %v1745_v17  ;;  %1039 = vmatpush.bf16.msrb.mxu1 %v1749_v20 }
 0x7dc   :  { %1435 = vmatmul.msk.bf16.vlgmr.msra.gmra.mxu0 %vm119_vm0, %v826_v63  ;;  %1436 = vmatmul.msk.bf16.vlgmr.msra.gmra.mxu1 %vm119_vm0, %v826_v63 }
 0x7dd   :  { %1104 = vmatpush.bf16.msra.mxu0 %v1751_v21  ;;  %1117 = vmatpush.bf16.msra.mxu1 %v1754_v22 }
 0x7e1   :  { %1105 = vmatpush.bf16.msra.mxu0 %v1760_v36  ;;  %1118 = vmatpush.bf16.msra.mxu1 %v1763_v39 }
 0x7e5   :  { %1106 = vmatpush.bf16.msra.mxu0 %v1773_v46  ;;  %1119 = vmatpush.bf16.msra.mxu1 %v1777_v48 }
 0x7e9   :  { %1107 = vmatpush.bf16.msra.mxu0 %v1782_v0  ;;  %1120 = vmatpush.bf16.msra.mxu1 %v1785_v55 }
 0x839   :  { %v762_v16 = vpop.f32.mrf.mxu0  ;;  %v775_v31 = vpop.f32.mrf.mxu1 }
 0x841   :  { %v764_v40 = vpop.f32.mrf.mxu0  ;;  %v777_v38 = vpop.f32.mrf.mxu1 }
 0x849   :  { %v839_v42 = vpop.f32.mrf.mxu0  ;;  %v852_v43 = vpop.f32.mrf.mxu1 }
 0x84a   :  { %v840_v26 = vadd.f32 %v839_v42, %v762_v16  ;;  %v853_v32 = vadd.f32 %v852_v43, %v775_v31 }
 0x84c   :  { %v856_v30 = vadd.f32 %v840_v26, %v1825_v10  ;;  %v857_v28 = vadd.f32 %v853_v32, %v1828_v23 }
 0x84e   :  { %v858_v50 = vmul.f32 0.5, %v856_v30  ;;  %v863_v5 = vmul.f32 0.5, %v857_v28 }
 0x850   :  { %1555 = vtanh.f32 %v858_v50 }
 0x851   :  { %v841_v14 = vpop.f32.mrf.mxu0  ;;  %v854_v13 = vpop.f32.mrf.mxu1  ;;  %1557 = vtanh.f32 %v857_v28 }
 0x856   :  { %v1556_v47 = vpop.eup %1555 }
 0x857   :  { %v860_v33 = vmul.f32 0.5, %v1556_v47  ;;  %v1558_v41 = vpop.eup %1557 }
 0x859   :  { %v861_v34 = vadd.f32 0.5, %v860_v33  ;;  %v924_v51 = vpop.f32.mrf.mxu0  ;;  %v937_v53 = vpop.f32.mrf.mxu1 }
 0x85a   :  { %v925_v54 = vadd.f32 %v924_v51, %v911_v29  ;;  %v938_v37 = vadd.f32 %v937_v53, %v912_v44 }
 0x85b   :  { %v868_v35 = vmul.f32 %v1558_v41, %v861_v34  ;;  %v867_v63 = vmul.f32 %v861_v34, %v1992_v61 }
 0x85c   :  { %v941_v57 = vmul.f32 0.5, %v925_v54  ;;  %v946_v32 = vmul.f32 0.5, %v938_v37 }
 0x85d   :  { %870 = vrot.lane.b32.xlu2 %v868_v35, %s1641_s24 }
 0x85e   :  { %1559 = vtanh.f32 %v941_v57 }
 0x85f   :  { %1561 = vtanh.f32 %v938_v37 }
 0x860   :  { %1563 = vtanh.f32 %v863_v5 }
 0x861   :  { %v926_v60 = vpop.f32.mrf.mxu0  ;;  %v939_v1 = vpop.f32.mrf.mxu1 }
 0x862   :  { %v1046_v60 = vrot.slane %v1982_v27, 4 }
 0x864   :  { %v1560_v45 = vpop.eup %1559 }
 0x865   :  { %v943_v59 = vmul.f32 0.5, %v1560_v45  ;;  %v1562_v6 = vpop.eup %1561 }
 0x866   :  { %v1564_v31 = vpop.eup %1563 }
 0x867   :  { %v944_v2 = vadd.f32 0.5, %v943_v59  ;;  %v865_v38 = vmul.f32 0.5, %v1564_v31 }
 0x869   :  { %v951_v9 = vmul.f32 %v1562_v6, %v944_v2  ;;  %v866_v42 = vadd.f32 0.5, %v865_v38  ;;  %v950_v50 = vmul.f32 %v944_v2, %v1988_v49 }
 0x86b   :  { %953 = vrot.lane.b32.xlu0 %v951_v9, %s1641_s24 }
 0x8b7   :  { %v871_v16 = vpop.permute.xlu2 %870 }
 0x8b8   :  { %v2034_v40 = vadd.f32 %v871_v16, %v867_v63 }
 0x8ba   :  { %1565 = vtanh.f32 %v2034_v40 }
 0x8bb   :  { %1567 = vtanh.f32 %v946_v32 }
 0x8c0   :  { %v1566_v43 = vpop.eup %1565 }
 0x8c1   :  { %v875_v26 = vmul.f32 %v1566_v43, %v866_v42  ;;  %v1568_v14 = vpop.eup %1567 }
 0x8c2   :  { %v948_v13 = vmul.f32 0.5, %v1568_v14 }
 0x8c3   :  { %v876_v30 = vpack.c.bf16 %v875_v26, %v875_v26 }
 0x8c4   :  { %v949_v47 = vadd.f32 0.5, %v948_v13 }
 0x8c5   :  { %878 = vrot.lane.b32.xlu1 %v876_v30, %s1641_s24 }
 0x8dd   :  { %v954_v28 = vpop.permute.xlu0 %953 }
 0x8de   :  { %v2039_v61 = vadd.f32 %v954_v28, %v950_v50 }
 0x8e0   :  { %1569 = vtanh.f32 %v2039_v61 }
 0x8e6   :  { %v1570_v33 = vpop.eup %1569 }
 0x8e7   :  { %v958_v29 = vmul.f32 %v1570_v33, %v949_v47 }
 0x8e9   :  { %v959_v34 = vpack.c.bf16 %v958_v29, %v958_v29 }
 0x8eb   :  { %961 = vrot.lane.b32.xlu2 %v959_v34, %s1641_s24 }
 0x937   :  { %v879_v51 = vpop.permute.xlu1 %878 }
 0x938   :  { %1433 = vmatmul.msk.bf16.vlgmr.msrb.gmra.mxu2 %vm119_vm0, %v879_v51  ;;  %1434 = vmatmul.msk.bf16.vlgmr.msrb.gmra.mxu3 %vm119_vm0, %v879_v51 }
 0x939   :  { %1053 = vmatpush.bf16.msrb.mxu2 %v1666_v4  ;;  %1066 = vmatpush.bf16.msrb.mxu3 %v1668_v8 }
 0x93d   :  { %1054 = vmatpush.bf16.msrb.mxu2 %v1671_v11  ;;  %1067 = vmatpush.bf16.msrb.mxu3 %v1674_v12 }
 0x941   :  { %1055 = vmatpush.bf16.msrb.mxu2 %v1680_v18  ;;  %1068 = vmatpush.bf16.msrb.mxu3 %v1683_v19 }
 0x945   :  { %1056 = vmatpush.bf16.msrb.mxu2 %v1686_v24  ;;  %1069 = vmatpush.bf16.msrb.mxu3 %v1689_v25  ;;  %v962_v49 = vpop.permute.xlu2 %961 }
 0x948   :  { %1437 = vmatmul.msk.bf16.vlgmr.msra.gmra.mxu2 %vm119_vm0, %v962_v49  ;;  %1438 = vmatmul.msk.bf16.vlgmr.msra.gmra.mxu3 %vm119_vm0, %v962_v49 }
 0x949   :  { %1157 = vmatpush.bf16.msra.mxu2 %v1724_v52  ;;  %1170 = vmatpush.bf16.msra.mxu3 %v1726_v56 }
 0x94d   :  { %1158 = vmatpush.bf16.msra.mxu2 %v1729_v58  ;;  %1171 = vmatpush.bf16.msra.mxu3 %v1733_v62 }
 0x951   :  { %1159 = vmatpush.bf16.msra.mxu2 %v1737_v3  ;;  %1172 = vmatpush.bf16.msra.mxu3 %v1741_v7 }
 0x955   :  { %1160 = vmatpush.bf16.msra.mxu2 %v1745_v17  ;;  %1173 = vmatpush.bf16.msra.mxu3 %v1749_v20 }
 0x958   :  { %1441 = vmatmul.msk.bf16.vlgmr.msrb.gmra.mxu2 %vm119_vm0, %v962_v49  ;;  %1442 = vmatmul.msk.bf16.vlgmr.msrb.gmra.mxu3 %vm119_vm0, %v962_v49 }
 0x959   :  { %1238 = vmatpush.bf16.msrb.mxu2 %v1751_v21  ;;  %1251 = vmatpush.bf16.msrb.mxu3 %v1754_v22 }
 0x95d   :  { %1239 = vmatpush.bf16.msrb.mxu2 %v1760_v36  ;;  %1252 = vmatpush.bf16.msrb.mxu3 %v1763_v39 }
 0x961   :  { %1240 = vmatpush.bf16.msrb.mxu2 %v1773_v46  ;;  %1253 = vmatpush.bf16.msrb.mxu3 %v1777_v48 }
 0x965   :  { %1241 = vmatpush.bf16.msrb.mxu2 %v1782_v0  ;;  %1254 = vmatpush.bf16.msrb.mxu3 %v1785_v55  ;;  %v1045_v55 = vrot.slane %v1977_v15, 4 }
 0x9bb   :  { %v892_v52 = vpop.f32.mrf.mxu2  ;;  %v905_v56 = vpop.f32.mrf.mxu3 }
 0x9c3   :  { %v894_v58 = vpop.f32.mrf.mxu2  ;;  %v907_v62 = vpop.f32.mrf.mxu3 }
 0x9cb   :  { %v975_v3 = vpop.f32.mrf.mxu2  ;;  %v988_v7 = vpop.f32.mrf.mxu3 }
 0x9cc   :  { %v976_v17 = vadd.f32 %v975_v3, %v892_v52  ;;  %v989_v21 = vadd.f32 %v988_v7, %v905_v56 }
 0x9ce   :  { %v992_v20 = vadd.f32 %v976_v17, %v1825_v10  ;;  %v993_v36 = vadd.f32 %v989_v21, %v1828_v23 }
 0x9d0   :  { %v994_v22 = vmul.f32 0.5, %v992_v20  ;;  %v999_v16 = vmul.f32 0.5, %v993_v36 }
 0x9d2   :  { %1571 = vtanh.f32 %v994_v22  ;;  %v1179_v22 = vrot.slane %v1977_v15, 6 }
 0x9d3   :  { %v977_v39 = vpop.f32.mrf.mxu2  ;;  %v990_v46 = vpop.f32.mrf.mxu3  ;;  %1573 = vtanh.f32 %v993_v36 }
 0x9d8   :  { %v1572_v48 = vpop.eup %1571 }
 0x9d9   :  { %v996_v0 = vmul.f32 0.5, %v1572_v48  ;;  %v1574_v35 = vpop.eup %1573 }
 0x9db   :  { %v997_v53 = vadd.f32 0.5, %v996_v0  ;;  %v1058_v41 = vpop.f32.mrf.mxu2  ;;  %v1071_v54 = vpop.f32.mrf.mxu3 }
 0x9dc   :  { %v1059_v57 = vadd.f32 %v1058_v41, %v1045_v55  ;;  %v1072_v1 = vadd.f32 %v1071_v54, %v1046_v60  ;;  %v1180_v41 = vrot.slane %v1982_v27, 6 }
 0x9dd   :  { %v1004_v44 = vmul.f32 %v1574_v35, %v997_v53  ;;  %v1003_v31 = vmul.f32 %v997_v53, %v2034_v40 }
 0x9de   :  { %v1075_v37 = vmul.f32 0.5, %v1059_v57  ;;  %v1080_v30 = vmul.f32 0.5, %v1072_v1 }
 0x9df   :  { %1006 = vrot.lane.b32.xlu0 %v1004_v44, %s1641_s24 }
 0x9e0   :  { %1575 = vtanh.f32 %v1075_v37 }
 0x9e1   :  { %1577 = vtanh.f32 %v1072_v1 }
 0x9e2   :  { %1579 = vtanh.f32 %v999_v16 }
 0x9e3   :  { %v1060_v45 = vpop.f32.mrf.mxu2  ;;  %v1073_v59 = vpop.f32.mrf.mxu3 }
 0x9e6   :  { %v1576_v2 = vpop.eup %1575 }
 0x9e7   :  { %v1077_v6 = vmul.f32 0.5, %v1576_v2  ;;  %v1578_v5 = vpop.eup %1577 }
 0x9e8   :  { %v1580_v42 = vpop.eup %1579 }
 0x9e9   :  { %v1078_v9 = vadd.f32 0.5, %v1077_v6  ;;  %v1001_v26 = vmul.f32 0.5, %v1580_v42 }
 0x9eb   :  { %v1085_v63 = vmul.f32 %v1578_v5, %v1078_v9  ;;  %v1002_v32 = vadd.f32 0.5, %v1001_v26  ;;  %v1084_v13 = vmul.f32 %v1078_v9, %v2039_v61 }
 0x9ed   :  { %1087 = vrot.lane.b32.xlu1 %v1085_v63, %s1641_s24 }
 0xa51   :  { %v1007_v38 = vpop.permute.xlu0 %1006 }
 0xa52   :  { %v2080_v43 = vadd.f32 %v1007_v38, %v1003_v31 }
 0xa54   :  { %1581 = vtanh.f32 %v2080_v43 }
 0xa55   :  { %1583 = vtanh.f32 %v1080_v30 }
 0xa5a   :  { %v1582_v50 = vpop.eup %1581 }
 0xa5b   :  { %v1011_v28 = vmul.f32 %v1582_v50, %v1002_v32  ;;  %v1584_v33 = vpop.eup %1583 }
 0xa5c   :  { %v1082_v29 = vmul.f32 0.5, %v1584_v33 }
 0xa5d   :  { %v1012_v14 = vpack.c.bf16 %v1011_v28, %v1011_v28 }
 0xa5e   :  { %v1083_v34 = vadd.f32 0.5, %v1082_v29 }
 0xa5f   :  { %v1088_v47 = vpop.permute.xlu1 %1087  ;;  %1014 = vrot.lane.b32.xlu2 %v1012_v14, %s1641_s24 }
 0xa60   :  { %v2085_v40 = vadd.f32 %v1088_v47, %v1084_v13 }
 0xa62   :  { %1585 = vtanh.f32 %v2085_v40 }
 0xa68   :  { %v1586_v51 = vpop.eup %1585 }
 0xa69   :  { %v1092_v49 = vmul.f32 %v1586_v51, %v1083_v34 }
 0xa6b   :  { %v1093_v52 = vpack.c.bf16 %v1092_v49, %v1092_v49 }
 0xa6d   :  { %1095 = vrot.lane.b32.xlu0 %v1093_v52, %s1641_s24 }
 0xab9   :  { %v1015_v56 = vpop.permute.xlu2 %1014 }
 0xaba   :  { %1439 = vmatmul.msk.bf16.vlgmr.msrb.gmra.mxu0 %vm119_vm0, %v1015_v56  ;;  %1440 = vmatmul.msk.bf16.vlgmr.msrb.gmra.mxu1 %vm119_vm0, %v1015_v56 }
 0xabb   :  { %1187 = vmatpush.bf16.msrb.mxu0 %v1666_v4  ;;  %1200 = vmatpush.bf16.msrb.mxu1 %v1668_v8 }
 0xabf   :  { %1188 = vmatpush.bf16.msrb.mxu0 %v1671_v11  ;;  %1201 = vmatpush.bf16.msrb.mxu1 %v1674_v12 }
 0xac3   :  { %1189 = vmatpush.bf16.msrb.mxu0 %v1680_v18  ;;  %1202 = vmatpush.bf16.msrb.mxu1 %v1683_v19 }
 0xac7   :  { %1190 = vmatpush.bf16.msrb.mxu0 %v1686_v24  ;;  %1203 = vmatpush.bf16.msrb.mxu1 %v1689_v25 }
 0xadf   :  { %v1096_v61 = vpop.permute.xlu0 %1095 }
 0xae0   :  { %1443 = vmatmul.msk.bf16.vlgmr.msra.gmra.mxu0 %vm119_vm0, %v1096_v61  ;;  %1444 = vmatmul.msk.bf16.vlgmr.msra.gmra.mxu1 %vm119_vm0, %v1096_v61 }
 0xaf0   :  { %1447 = vmatmul.msk.bf16.vlgmr.msrb.gmra.mxu0 %vm119_vm0, %v1096_v61  ;;  %1448 = vmatmul.msk.bf16.vlgmr.msrb.gmra.mxu1 %vm119_vm0, %v1096_v61 }
 0xb37   :  { %v1028_v4 = vpop.f32.mrf.mxu0  ;;  %v1041_v8 = vpop.f32.mrf.mxu1 }
 0xb3f   :  { %v1030_v11 = vpop.f32.mrf.mxu0  ;;  %v1043_v12 = vpop.f32.mrf.mxu1 }
 0xb5d   :  { %v1109_v18 = vpop.f32.mrf.mxu0  ;;  %v1122_v58 = vpop.f32.mrf.mxu1 }
 0xb5e   :  { %v1110_v19 = vadd.f32 %v1109_v18, %v1028_v4  ;;  %v1123_v62 = vadd.f32 %v1122_v58, %v1041_v8 }
 0xb60   :  { %v1126_v24 = vadd.f32 %v1110_v19, %v1825_v10  ;;  %v1127_v3 = vadd.f32 %v1123_v62, %v1828_v23 }
 0xb62   :  { %v1128_v25 = vmul.f32 0.5, %v1126_v24  ;;  %v1133_v6 = vmul.f32 0.5, %v1127_v3 }
 0xb64   :  { %1587 = vtanh.f32 %v1128_v25 }
 0xb65   :  { %v1111_v7 = vpop.f32.mrf.mxu0  ;;  %v1124_v17 = vpop.f32.mrf.mxu1  ;;  %1589 = vtanh.f32 %v1127_v3 }
 0xb6a   :  { %v1588_v20 = vpop.eup %1587 }
 0xb6b   :  { %v1130_v21 = vmul.f32 0.5, %v1588_v20  ;;  %v1590_v48 = vpop.eup %1589 }
 0xb6d   :  { %v1131_v36 = vadd.f32 0.5, %v1130_v21  ;;  %v1192_v39 = vpop.f32.mrf.mxu0  ;;  %v1205_v46 = vpop.f32.mrf.mxu1 }
 0xb6e   :  { %v1193_v0 = vadd.f32 %v1192_v39, %v1179_v22  ;;  %v1206_v54 = vadd.f32 %v1205_v46, %v1180_v41  ;;  %v1452_v41 = vld [vmem:[%s2133_s2 + $0x4] ss:$8 sm:$0x3] }
 0xb6f   :  { %v1138_v55 = vmul.f32 %v1590_v48, %v1131_v36  ;;  %v1137_v31 = vmul.f32 %v1131_v36, %v2080_v43 }
 0xb70   :  { %v1209_v53 = vmul.f32 0.5, %v1193_v0  ;;  %v1214_v45 = vmul.f32 0.5, %v1206_v54 }
 0xb71   :  { %1140 = vrot.lane.b32.xlu1 %v1138_v55, %s1641_s24 }
 0xb72   :  { %1591 = vtanh.f32 %v1209_v53 }
 0xb73   :  { %1593 = vtanh.f32 %v1206_v54  ;;  %v1299_v54 = vperm.slane %v1452_v41, 0 }
 0xb74   :  { %1595 = vtanh.f32 %v1214_v45 }
 0xb75   :  { %v1194_v35 = vpop.f32.mrf.mxu0  ;;  %v1207_v57 = vpop.f32.mrf.mxu1 }
 0xb78   :  { %v1592_v44 = vpop.eup %1591 }
 0xb79   :  { %v1211_v37 = vmul.f32 0.5, %v1592_v44  ;;  %v1594_v15 = vpop.eup %1593 }
 0xb7a   :  { %v1596_v27 = vpop.eup %1595 }
 0xb7b   :  { %v1212_v60 = vadd.f32 0.5, %v1211_v37  ;;  %v1216_v5 = vmul.f32 0.5, %v1596_v27 }
 0xb7d   :  { %v1219_v1 = vmul.f32 %v1594_v15, %v1212_v60  ;;  %v1218_v59 = vmul.f32 %v1212_v60, %v2085_v40  ;;  %v1217_v63 = vadd.f32 0.5, %v1216_v5  ;;  %v1451_v40 = vld [vmem:[%s2133_s2 + $0x3] ss:$8 sm:$0x3] }
 0xb7e   :  { %v1285_v29 = vperm.slane %v1451_v40, 0 }
 0xb7f   :  { %1221 = vrot.lane.b32.xlu2 %v1219_v1, %s1641_s24 }
 0xbd9   :  { %v1222_v2 = vpop.permute.xlu2 %1221 }
 0xbda   :  { %v1224_v9 = vadd.f32 %v1222_v2, %v1218_v59 }
 0xbdc   :  { %1597 = vtanh.f32 %v1224_v9 }
 0xbdd   :  { %1599 = vtanh.f32 %v1133_v6 }
 0xbe2   :  { %v1598_v16 = vpop.eup %1597 }
 0xbe3   :  { %v1141_v38 = vpop.permute.xlu1 %1140  ;;  %v1226_v42 = vmul.f32 %v1598_v16, %v1217_v63  ;;  %v1600_v26 = vpop.eup %1599 }
 0xbe4   :  { %v1143_v30 = vadd.f32 %v1141_v38, %v1137_v31  ;;  %v1135_v50 = vmul.f32 0.5, %v1600_v26 }
 0xbe5   :  { %v1227_v32 = vpack.c.bf16 %v1226_v42, %v1226_v42 }
 0xbe6   :  { %1601 = vtanh.f32 %v1143_v30  ;;  %v1136_v28 = vadd.f32 0.5, %v1135_v50 }
 0xbe7   :  { %1229 = vrot.lane.b32.xlu1 %v1227_v32, %s1641_s24 }
 0xbec   :  { %v1602_v14 = vpop.eup %1601 }
 0xbed   :  { %v1145_v13 = vmul.f32 %v1602_v14, %v1136_v28 }
 0xbef   :  { %v1146_v47 = vpack.c.bf16 %v1145_v13, %v1145_v13 }
 0xbf1   :  { %1148 = vrot.lane.b32.xlu0 %v1146_v47, %s1641_s24 }
 0xbf9   :  { %1286 = vrot.lane.b32.xlu0 %v1285_v29, %s1641_s24 }
 0xc59   :  { %v1230_v43 = vpop.permute.xlu1 %1229 }
 0xc63   :  { %v1149_v33 = vpop.permute.xlu0 %1148 }
 0xc64   :  { %1445 = vmatmul.msk.bf16.vlgmr.msra.gmra.mxu2 %vm119_vm0, %v1149_v33  ;;  %1446 = vmatmul.msk.bf16.vlgmr.msra.gmra.mxu3 %vm119_vm0, %v1149_v33 }
 0xc6b   :  { %v1287_v46 = vpop.permute.xlu0 %1286 }
 0xc74   :  { %1449 = vmatmul.msk.bf16.vlgmr.msrb.gmra.mxu2 %vm119_vm0, %v1230_v43  ;;  %1450 = vmatmul.msk.bf16.vlgmr.msrb.gmra.mxu3 %vm119_vm0, %v1230_v43 }
 0xce7   :  { %v1162_v34 = vpop.f32.mrf.mxu2  ;;  %v1175_v51 = vpop.f32.mrf.mxu3 }
 0xcef   :  { %v1164_v49 = vpop.f32.mrf.mxu2  ;;  %v1177_v52 = vpop.f32.mrf.mxu3 }
 0xcf7   :  { %v1243_v56 = vpop.f32.mrf.mxu2  ;;  %v1256_v61 = vpop.f32.mrf.mxu3 }
 0xcf8   :  { %v1244_v4 = vadd.f32 %v1243_v56, %v1162_v34  ;;  %v1257_v11 = vadd.f32 %v1256_v61, %v1175_v51 }
 0xcfa   :  { %v1260_v8 = vadd.f32 %v1244_v4, %v1825_v10  ;;  %v1261_v18 = vadd.f32 %v1257_v11, %v1828_v23 }
 0xcfc   :  { %v1262_v12 = vmul.f32 0.5, %v1260_v8  ;;  %v1267_v17 = vmul.f32 0.5, %v1261_v18 }
 0xcfe   :  { %1603 = vtanh.f32 %v1262_v12 }
 0xcff   :  { %v1245_v58 = vpop.f32.mrf.mxu2  ;;  %v1258_v19 = vpop.f32.mrf.mxu3  ;;  %1605 = vtanh.f32 %v1261_v18 }
 0xd00   :  { %1607 = vtanh.f32 %v1267_v17 }
 0xd04   :  { %v1604_v24 = vpop.eup %1603 }
 0xd05   :  { %v1264_v62 = vmul.f32 0.5, %v1604_v24  ;;  %v1606_v3 = vpop.eup %1605 }
 0xd06   :  { %v1608_v10 = vpop.eup %1607 }
 0xd07   :  { %v1265_v25 = vadd.f32 0.5, %v1264_v62  ;;  %v1269_v36 = vmul.f32 0.5, %v1608_v10 }
 0xd09   :  { %v1272_v7 = vmul.f32 %v1606_v3, %v1265_v25  ;;  %v1271_v20 = vmul.f32 %v1265_v25, %v1143_v30  ;;  %v1270_v39 = vadd.f32 0.5, %v1269_v36 }
 0xd0b   :  { %1274 = vrot.lane.b32.xlu2 %v1272_v7, %s1641_s24 }
 0xd65   :  { %v1275_v21 = vpop.permute.xlu2 %1274 }
 0xd66   :  { %v1277_v22 = vadd.f32 %v1275_v21, %v1271_v20 }
 0xd68   :  { %1609 = vtanh.f32 %v1277_v22 }
 0xd6e   :  { %v1610_v23 = vpop.eup %1609 }
 0xd6f   :  { %v1279_v48 = vmul.f32 %v1610_v23, %v1270_v39 }
 0xd71   :  { %v1289_v0 = vmul.f32 %v1287_v46, %v1279_v48 }
 0xd73   :  { %1291 = vrot.lane.b32.xlu1 %v1289_v0, %s1641_s24 }
 0xde5   :  { %v1292_v55 = vpop.permute.xlu1 %1291 }
 0xde6   :  { %v1295_v53 = vsel %vm1294_vm1, %v1292_v55, 0.0 }
 0xde7   :  { %1296 = vadd.xlane.f32.xlu2 %v1295_v53 }
 0xe5a   :  { %v1297_v35 = vpop.xlane.xlu2 %1296 }
 0xe5b   :  { %v1301_v57 = vadd.f32 %v1299_v54, %v1297_v35 }
 0xe5d   :  { %1303 = vst.msk [vmem:[%s2134_s3] sm:$0x3] %vm1302_vm2, %v1301_v57 }
 0xe5e   :  { %1308 = vsyncpa [#allocation3], 1 }

</bundles_post_ra>
